<compile_context>
chip_gen: v5e
topology: v5e:2x2
jax: 0.10.0
libtpu: 0.0.40
codegen_flags: <defaults>
</compile_context>

<pallas_src>
import math
import functools

import jax
import jax.numpy as jnp
from jax import lax
from jax.experimental import pallas as pl
from jax.experimental.pallas import tpu as pltpu

KEY_DIM = 128   # key_feature_dim hard-coded in the layer's attention
TEMP = 30.0     # RelationUnit softmax temperature


def fused_decoder_kernel(tgt_ref, pe_ref, mem_ref, pos_ref,
                         wks_ref, bks_ref, wkc_ref, bkc_ref,
                         out_ref,
                         wkmem_ref, val_ref, posbf_ref,
                         *, num_layers, num_imgs, hw, d_model, norm_scale):
    """All decoder layers for one batch element, state resident in VMEM."""
    L_q = tgt_ref.shape[1]
    Dp = tgt_ref.shape[2]
    inorm_const = norm_scale * math.sqrt(float(d_model * hw))

    def l2n(x):
        # F.normalize(x, p=2, dim=-1), eps=1e-12  ==  x * rsqrt(max(||x||^2, 1e-24))
        ss = jnp.sum(x * x, axis=-1, keepdims=True)
        return x * lax.rsqrt(jnp.maximum(ss, 1e-24))

    def softmax(x):
        m = jnp.max(x, axis=-1, keepdims=True)
        e = jnp.exp(x - m)
        return e * pl.reciprocal(jnp.sum(e, axis=-1, keepdims=True), approx=True)

    def inst_norm(x):
        # InstanceL2Norm per (num_img) sample over (dim, h, w); vectorized.
        if num_imgs == 1:
            ss = jnp.sum(x * x)
            return x * (inorm_const * lax.rsqrt(ss + 1e-5))
        x3 = x.reshape(num_imgs, hw, Dp)
        ss = jnp.sum(x3 * x3, axis=(1, 2), keepdims=True)
        return (x3 * (inorm_const * lax.rsqrt(ss + 1e-5))).reshape(L_q, Dp)

    # ---- layer-invariant (hoisted) work: computed once, cached in VMEM scratch ----
    mem = mem_ref[0]                       # (L_m, Dp) f32
    pos = pos_ref[0]                       # (L_m, Dp) f32 (gaussian label bcast over D)
    wkmem_ref[...] = l2n(
        jnp.dot(mem.astype(jnp.bfloat16), wkc_ref[...],
                preferred_element_type=jnp.float32) + bkc_ref[...]
    ).astype(jnp.bfloat16)                 # (L_m, 128)
    val_ref[...] = (mem * pos).astype(jnp.bfloat16)   # value = memory * pos
    posbf_ref[...] = pos.astype(jnp.bfloat16)

    pe = pe_ref[0]                         # (L_q, Dp) f32

    def layer(_, x):
        # tgt = tgt + pos_embed * 0.001 (applied at the top of every layer)
        x = x + pe * 0.001
        x_bf = x.astype(jnp.bfloat16)

        # ---- self attention (query = key = value = tgt) ----
        wq_s = l2n(jnp.dot(x_bf, wks_ref[...],
                           preferred_element_type=jnp.float32) + bks_ref[...])
        wq_s_bf = wq_s.astype(jnp.bfloat16)
        aff_s = softmax(TEMP * lax.dot_general(
            wq_s_bf, wq_s_bf, (((1,), (1,)), ((), ())),
            preferred_element_type=jnp.float32))
        tgt2 = jnp.dot(aff_s.astype(jnp.bfloat16), x_bf,
                       preferred_element_type=jnp.float32)
        x = inst_norm(x + tgt2)
        x_bf = x.astype(jnp.bfloat16)

        # ---- cross attention: both reference calls share query=tgt, key=memory,
        #      so the affinity matrix is identical and computed once ----
        wq_c = l2n(jnp.dot(x_bf, wkc_ref[...],
                           preferred_element_type=jnp.float32) + bkc_ref[...])
        aff_c = softmax(TEMP * lax.dot_general(
            wq_c.astype(jnp.bfloat16), wkmem_ref[...], (((1,), (1,)), ((), ())),
            preferred_element_type=jnp.float32))
        aff_c_bf = aff_c.astype(jnp.bfloat16)

        mask = jnp.dot(aff_c_bf, posbf_ref[...],
                       preferred_element_type=jnp.float32)    # value = pos
        t2 = inst_norm(x * mask)
        t3 = jnp.dot(aff_c_bf, val_ref[...],
                     preferred_element_type=jnp.float32)      # value = memory*pos
        t4 = inst_norm(x + t3)
        return inst_norm(t2 + t4)

    x0 = tgt_ref[0]
    out_ref[0] = lax.fori_loop(0, num_layers, layer, x0)


def make_fused_call(batch, L_q, L_m, Dp, num_imgs, hw, d_model, norm_scale,
                    num_layers):
    kern = functools.partial(fused_decoder_kernel, num_layers=num_layers,
                             num_imgs=num_imgs, hw=hw, d_model=d_model,
                             norm_scale=norm_scale)
    return pl.pallas_call(
        kern,
        out_shape=jax.ShapeDtypeStruct((batch, L_q, Dp), jnp.float32),
        grid_spec=pltpu.PrefetchScalarGridSpec(
            num_scalar_prefetch=0,
            grid=(batch,),
            in_specs=[
                pl.BlockSpec((1, L_q, Dp), lambda b: (b, 0, 0)),   # tgt
                pl.BlockSpec((1, L_q, Dp), lambda b: (b, 0, 0)),   # pos_embed
                pl.BlockSpec((1, L_m, Dp), lambda b: (b, 0, 0)),   # memory
                pl.BlockSpec((1, L_m, Dp), lambda b: (b, 0, 0)),   # pos (bcast over D)
                pl.BlockSpec((Dp, KEY_DIM), lambda b: (0, 0)),     # WK self (Dp, 128) bf16
                pl.BlockSpec((1, KEY_DIM), lambda b: (0, 0)),      # bK self f32
                pl.BlockSpec((Dp, KEY_DIM), lambda b: (0, 0)),     # WK cross bf16
                pl.BlockSpec((1, KEY_DIM), lambda b: (0, 0)),      # bK cross f32
            ],
            out_specs=pl.BlockSpec((1, L_q, Dp), lambda b: (b, 0, 0)),
            scratch_shapes=[
                pltpu.VMEM((L_m, KEY_DIM), jnp.bfloat16),   # L2norm(WK_c(memory))
                pltpu.VMEM((L_m, Dp), jnp.bfloat16),        # memory * pos
                pltpu.VMEM((L_m, Dp), jnp.bfloat16),        # pos (bf16)
            ],
        ),
        compiler_params=pltpu.CompilerParams(
            dimension_semantics=("parallel",),
            vmem_limit_bytes=64 * 1024 * 1024,
        ),
    )


def transformer_embed_decoder(tgt, pos_embed, memory, pos, params,
                              num_decoder_layers=6):
    """Matches TransformerEmbedDecoder.forward; returns (output, output_feat)."""
    num_imgs, batch, dim, h, w = tgt.shape
    hw = h * w
    norm_scale = math.sqrt(1.0 / (dim * 4 * 4))
    L_q = num_imgs * hw
    L_m = memory.shape[0]
    Dp = ((dim + 127) // 128) * 128        # lane-dense padded model dim

    def pad_d(x):  # zero-pad last dim to Dp (exact: padded cols stay zero)
        x = x.astype(jnp.float32)
        if Dp == dim:
            return x
        return jnp.pad(x, ((0, 0), (0, 0), (0, Dp - dim)))

    # (num_imgs, B, D, h, w) -> (B, num_imgs*h*w, D)
    def to_seq(x):
        return x.reshape(num_imgs, batch, dim, hw).transpose(1, 0, 3, 2).reshape(
            batch, L_q, dim)

    tgt_b = pad_d(to_seq(tgt))
    pe_b = pad_d(to_seq(pos_embed))
    mem_b = pad_d(jnp.transpose(memory, (1, 0, 2)))                  # (B, L_m, D)

    # pos: (num_pos, B, h, w) -> (B, num_pos*h*w) -> broadcast over D
    num_pos = pos.shape[0]
    pos_bt = jnp.transpose(pos.reshape(num_pos, batch, hw), (1, 0, 2)).reshape(
        batch, num_pos * hw)
    pos_b = pad_d(jnp.broadcast_to(pos_bt[:, :, None], (batch, L_m, dim)))

    # Projection weights stored transposed (D, 128), zero-padded rows, bf16.
    def pad_w(wt):  # (dim, KEY_DIM) -> (Dp, KEY_DIM)
        wt = wt.astype(jnp.float32)
        if Dp != dim:
            wt = jnp.pad(wt, ((0, Dp - dim), (0, 0)))
        return wt.astype(jnp.bfloat16)

    wk_s = pad_w(params["wk_self"].T)
    wk_c = pad_w(params["wk_cross"].T)
    bk_s = params["bk_self"].reshape(1, KEY_DIM).astype(jnp.float32)
    bk_c = params["bk_cross"].reshape(1, KEY_DIM).astype(jnp.float32)

    fused = make_fused_call(batch, L_q, L_m, Dp, num_imgs, hw, dim, norm_scale,
                            num_decoder_layers)
    out = fused(tgt_b, pe_b, mem_b, pos_b, wk_s, bk_s, wk_c, bk_c)

    x = out[..., :dim]                               # strip lane padding
    output = jnp.transpose(x, (1, 0, 2))             # (num_imgs*h*w, batch, dim)
    output_feat = output.reshape(num_imgs, h, w, batch, dim).transpose(
        0, 3, 4, 1, 2).reshape(-1, dim, h, w)        # (num_imgs*batch, dim, h, w)
    return output, output_feat


if __name__ == "__main__":
    num_imgs, batch, dim, h, w = 1, 2, 32, 8, 8
    num_pos = 1
    L_m = num_pos * h * w

    key = jax.random.PRNGKey(0)
    k_tgt, k_pe, k_mem, k_pos, k_ws, k_wc = jax.random.split(key, 6)

    tgt = jax.random.normal(k_tgt, (num_imgs, batch, dim, h, w), jnp.float32)
    pos_embed = jax.random.normal(k_pe, (num_imgs, batch, dim, h, w), jnp.float32)
    memory = jax.random.normal(k_mem, (L_m, batch, dim), jnp.float32)
    pos = jax.random.uniform(k_pos, (num_pos, batch, h, w), jnp.float32)

    # Deterministic parameter init (mirrors RelationUnit: WK ~ N(0, sqrt(2/out)), bias=0).
    params = {
        "wk_self": jax.random.normal(k_ws, (KEY_DIM, dim), jnp.float32) * math.sqrt(2.0 / KEY_DIM),
        "bk_self": jnp.zeros((KEY_DIM,), jnp.float32),
        "wk_cross": jax.random.normal(k_wc, (KEY_DIM, dim), jnp.float32) * math.sqrt(2.0 / KEY_DIM),
        "bk_cross": jnp.zeros((KEY_DIM,), jnp.float32),
    }

    fwd = jax.jit(functools.partial(transformer_embed_decoder, num_decoder_layers=6))
    output, output_feat = fwd(tgt, pos_embed, memory, pos, params)
    jax.block_until_ready((output, output_feat))
    assert output.shape == (num_imgs * h * w, batch, dim)
    assert output_feat.shape == (num_imgs * batch, dim, h, w)
    assert bool(jnp.all(jnp.isfinite(output)))
    print("KERNEL_OK")
</pallas_src>

<mosaic_0001>
module attributes {stable_mosaic.version = 11 : i64} {
  func.func @fused_decoder_kernel(%arg0: i32, %arg1: memref<1x64x128xf32, #tpu.memory_space<vmem>>, %arg2: memref<1x64x128xf32, #tpu.memory_space<vmem>>, %arg3: memref<1x64x128xf32, #tpu.memory_space<vmem>>, %arg4: memref<1x64x128xf32, #tpu.memory_space<vmem>>, %arg5: memref<128x128xbf16, #tpu.memory_space<vmem>>, %arg6: memref<1x128xf32, #tpu.memory_space<vmem>>, %arg7: memref<128x128xbf16, #tpu.memory_space<vmem>>, %arg8: memref<1x128xf32, #tpu.memory_space<vmem>>, %arg9: memref<1x64x128xf32, #tpu.memory_space<vmem>>, %arg10: memref<64x128xbf16, #tpu.memory_space<vmem>>, %arg11: memref<64x128xbf16, #tpu.memory_space<vmem>>, %arg12: memref<64x128xbf16, #tpu.memory_space<vmem>>) attributes {dimension_semantics = [#tpu.dimension_semantics<parallel>], iteration_bounds = array<i64: 2>, scalar_prefetch = 0 : i64, scratch_operands = 3 : i64, tpu.core_type = #tpu.core_type<tc>, window_params = [{transform_indices = @transform_0, window_bounds = array<i64: 1, 64, 128>}, {transform_indices = @transform_1, window_bounds = array<i64: 1, 64, 128>}, {transform_indices = @transform_2, window_bounds = array<i64: 1, 64, 128>}, {transform_indices = @transform_3, window_bounds = array<i64: 1, 64, 128>}, {pipeline_mode = #tpu.pipeline_mode<synchronous>, transform_indices = @transform_4, window_bounds = array<i64: 128, 128>}, {pipeline_mode = #tpu.pipeline_mode<synchronous>, transform_indices = @transform_5, window_bounds = array<i64: 1, 128>}, {pipeline_mode = #tpu.pipeline_mode<synchronous>, transform_indices = @transform_6, window_bounds = array<i64: 128, 128>}, {pipeline_mode = #tpu.pipeline_mode<synchronous>, transform_indices = @transform_7, window_bounds = array<i64: 1, 128>}, {transform_indices = @transform_8, window_bounds = array<i64: 1, 64, 128>}]} {
    %c0 = arith.constant 0 : index
    %c0_0 = arith.constant 0 : index
    %c0_1 = arith.constant 0 : index
    %0 = vector.load %arg3[%c0, %c0_0, %c0_1] : memref<1x64x128xf32, #tpu.memory_space<vmem>>, vector<1x64x128xf32>
    %1 = vector.shape_cast %0 : vector<1x64x128xf32> to vector<64x128xf32>
    %c0_2 = arith.constant 0 : index
    %c0_3 = arith.constant 0 : index
    %c0_4 = arith.constant 0 : index
    %2 = vector.load %arg4[%c0_2, %c0_3, %c0_4] : memref<1x64x128xf32, #tpu.memory_space<vmem>>, vector<1x64x128xf32>
    %3 = vector.shape_cast %2 : vector<1x64x128xf32> to vector<64x128xf32>
    %4 = arith.truncf %1 : vector<64x128xf32> to vector<64x128xbf16>
    %c0_5 = arith.constant 0 : index
    %c0_6 = arith.constant 0 : index
    %5 = vector.load %arg7[%c0_5, %c0_6] : memref<128x128xbf16, #tpu.memory_space<vmem>>, vector<128x128xbf16>
    %cst = arith.constant dense<0.000000e+00> : vector<64x128xf32>
    %6 = tpu.matmul %4, %5, %cst {dimension_numbers = #tpu.dot_dimension_numbers<[1], [0], [0], [1], [0, 0, 1, 1], [], []>} : vector<64x128xbf16>, vector<128x128xbf16>, vector<64x128xf32> -> vector<64x128xf32>
    %c0_7 = arith.constant 0 : index
    %c0_8 = arith.constant 0 : index
    %7 = vector.load %arg8[%c0_7, %c0_8] : memref<1x128xf32, #tpu.memory_space<vmem>>, vector<1x128xf32>
    %8 = vector.broadcast %7 : vector<1x128xf32> to vector<64x128xf32>
    %9 = arith.addf %6, %8 : vector<64x128xf32>
    %10 = arith.mulf %9, %9 : vector<64x128xf32>
    %cst_9 = arith.constant dense<0.000000e+00> : vector<64xf32>
    %11 = vector.multi_reduction <add>, %10, %cst_9 [1] : vector<64x128xf32> to vector<64xf32>
    %12 = vector.shape_cast %11 : vector<64xf32> to vector<64x1xf32>
    %cst_10 = arith.constant 1.000000e-24 : f32
    %13 = vector.broadcast %cst_10 : f32 to vector<64x1xf32>
    %14 = arith.maximumf %12, %13 : vector<64x1xf32>
    %15 = math.rsqrt %14 : vector<64x1xf32>
    %16 = vector.broadcast %15 : vector<64x1xf32> to vector<64x128xf32>
    %17 = arith.mulf %9, %16 : vector<64x128xf32>
    %18 = arith.truncf %17 : vector<64x128xf32> to vector<64x128xbf16>
    %c0_11 = arith.constant 0 : index
    %c0_12 = arith.constant 0 : index
    %19 = vector.load %arg10[%c0_11, %c0_12] : memref<64x128xbf16, #tpu.memory_space<vmem>>, vector<64x128xbf16>
    tpu.vector_store %arg10[%c0_11, %c0_12], %18 {strides = array<i32>} : memref<64x128xbf16, #tpu.memory_space<vmem>>, vector<64x128xbf16>,
    %20 = arith.mulf %1, %3 : vector<64x128xf32>
    %21 = arith.truncf %20 : vector<64x128xf32> to vector<64x128xbf16>
    %c0_13 = arith.constant 0 : index
    %c0_14 = arith.constant 0 : index
    %22 = vector.load %arg11[%c0_13, %c0_14] : memref<64x128xbf16, #tpu.memory_space<vmem>>, vector<64x128xbf16>
    tpu.vector_store %arg11[%c0_13, %c0_14], %21 {strides = array<i32>} : memref<64x128xbf16, #tpu.memory_space<vmem>>, vector<64x128xbf16>,
    %23 = arith.truncf %3 : vector<64x128xf32> to vector<64x128xbf16>
    %c0_15 = arith.constant 0 : index
    %c0_16 = arith.constant 0 : index
    %24 = vector.load %arg12[%c0_15, %c0_16] : memref<64x128xbf16, #tpu.memory_space<vmem>>, vector<64x128xbf16>
    tpu.vector_store %arg12[%c0_15, %c0_16], %23 {strides = array<i32>} : memref<64x128xbf16, #tpu.memory_space<vmem>>, vector<64x128xbf16>,
    %c0_17 = arith.constant 0 : index
    %c0_18 = arith.constant 0 : index
    %c0_19 = arith.constant 0 : index
    %25 = vector.load %arg2[%c0_17, %c0_18, %c0_19] : memref<1x64x128xf32, #tpu.memory_space<vmem>>, vector<1x64x128xf32>
    %26 = vector.shape_cast %25 : vector<1x64x128xf32> to vector<64x128xf32>
    %c0_20 = arith.constant 0 : index
    %c0_21 = arith.constant 0 : index
    %c0_22 = arith.constant 0 : index
    %27 = vector.load %arg1[%c0_20, %c0_21, %c0_22] : memref<1x64x128xf32, #tpu.memory_space<vmem>>, vector<1x64x128xf32>
    %28 = vector.shape_cast %27 : vector<1x64x128xf32> to vector<64x128xf32>
    %c0_i32 = arith.constant 0 : i32
    %c6_i32 = arith.constant 6 : i32
    %29 = arith.addi %c0_i32, %c6_i32 : i32
    %c1_i32 = arith.constant 1 : i32
    %30 = scf.for %arg13 = %c0_i32 to %29 step %c1_i32 iter_args(%arg14 = %28) -> (vector<64x128xf32>)  : i32 {
      %cst_26 = arith.constant 1.000000e-03 : f32
      %34 = vector.broadcast %cst_26 : f32 to vector<64x128xf32>
      %35 = arith.mulf %26, %34 : vector<64x128xf32>
      %36 = arith.addf %arg14, %35 : vector<64x128xf32>
      %37 = arith.truncf %36 : vector<64x128xf32> to vector<64x128xbf16>
      %c0_27 = arith.constant 0 : index
      %c0_28 = arith.constant 0 : index
      %38 = vector.load %arg5[%c0_27, %c0_28] : memref<128x128xbf16, #tpu.memory_space<vmem>>, vector<128x128xbf16>
      %cst_29 = arith.constant dense<0.000000e+00> : vector<64x128xf32>
      %39 = tpu.matmul %37, %38, %cst_29 {dimension_numbers = #tpu.dot_dimension_numbers<[1], [0], [0], [1], [0, 0, 1, 1], [], []>} : vector<64x128xbf16>, vector<128x128xbf16>, vector<64x128xf32> -> vector<64x128xf32>
      %c0_30 = arith.constant 0 : index
      %c0_31 = arith.constant 0 : index
      %40 = vector.load %arg6[%c0_30, %c0_31] : memref<1x128xf32, #tpu.memory_space<vmem>>, vector<1x128xf32>
      %41 = vector.broadcast %40 : vector<1x128xf32> to vector<64x128xf32>
      %42 = arith.addf %39, %41 : vector<64x128xf32>
      %43 = arith.mulf %42, %42 : vector<64x128xf32>
      %cst_32 = arith.constant dense<0.000000e+00> : vector<64xf32>
      %44 = vector.multi_reduction <add>, %43, %cst_32 [1] : vector<64x128xf32> to vector<64xf32>
      %45 = vector.shape_cast %44 : vector<64xf32> to vector<64x1xf32>
      %cst_33 = arith.constant 1.000000e-24 : f32
      %46 = vector.broadcast %cst_33 : f32 to vector<64x1xf32>
      %47 = arith.maximumf %45, %46 : vector<64x1xf32>
      %48 = math.rsqrt %47 : vector<64x1xf32>
      %49 = vector.broadcast %48 : vector<64x1xf32> to vector<64x128xf32>
      %50 = arith.mulf %42, %49 : vector<64x128xf32>
      %51 = arith.truncf %50 : vector<64x128xf32> to vector<64x128xbf16>
      %cst_34 = arith.constant dense<0.000000e+00> : vector<64x64xf32>
      %52 = tpu.matmul %51, %51, %cst_34 {dimension_numbers = #tpu.dot_dimension_numbers<[1], [1], [0], [0], [0, 0, 1, 0], [], []>} : vector<64x128xbf16>, vector<64x128xbf16>, vector<64x64xf32> -> vector<64x64xf32>
      %cst_35 = arith.constant 3.000000e+01 : f32
      %53 = vector.broadcast %cst_35 : f32 to vector<64x64xf32>
      %54 = arith.mulf %53, %52 : vector<64x64xf32>
      %cst_36 = arith.constant dense<0xFF800000> : vector<64xf32>
      %55 = vector.multi_reduction <maximumf>, %54, %cst_36 [1] : vector<64x64xf32> to vector<64xf32>
      %56 = vector.shape_cast %55 : vector<64xf32> to vector<64x1xf32>
      %57 = vector.broadcast %56 : vector<64x1xf32> to vector<64x64xf32>
      %58 = arith.subf %54, %57 : vector<64x64xf32>
      %59 = math.exp %58 : vector<64x64xf32>
      %cst_37 = arith.constant dense<0.000000e+00> : vector<64xf32>
      %60 = vector.multi_reduction <add>, %59, %cst_37 [1] : vector<64x64xf32> to vector<64xf32>
      %61 = vector.shape_cast %60 : vector<64xf32> to vector<64x1xf32>
      %62 = tpu.reciprocal %61 {approx = true} : vector<64x1xf32> -> vector<64x1xf32>
      %63 = vector.broadcast %62 : vector<64x1xf32> to vector<64x64xf32>
      %64 = arith.mulf %59, %63 : vector<64x64xf32>
      %65 = arith.truncf %64 : vector<64x64xf32> to vector<64x64xbf16>
      %cst_38 = arith.constant dense<0.000000e+00> : vector<64x128xf32>
      %66 = tpu.matmul %65, %37, %cst_38 {dimension_numbers = #tpu.dot_dimension_numbers<[1], [0], [0], [1], [0, 0, 1, 1], [], []>} : vector<64x64xbf16>, vector<64x128xbf16>, vector<64x128xf32> -> vector<64x128xf32>
      %67 = arith.addf %36, %66 : vector<64x128xf32>
      %68 = arith.mulf %67, %67 : vector<64x128xf32>
      %69 = vector.shape_cast %68 : vector<64x128xf32> to vector<1x64x128xf32>
      %cst_39 = arith.constant dense<0.000000e+00> : vector<1xf32>
      %70 = vector.multi_reduction <add>, %69, %cst_39 [1, 2] : vector<1x64x128xf32> to vector<1xf32>
      %71 = vector.shape_cast %70 : vector<1xf32> to vector<1x1x1xf32>
      %72 = vector.extract %71[0, 0, 0] : f32 from vector<1x1x1xf32>
      %cst_40 = arith.constant 9.99999974E-6 : f32
      %73 = arith.addf %72, %cst_40 : f32
      %74 = math.rsqrt %73 : f32
      %cst_41 = arith.constant 2.000000e+00 : f32
      %75 = arith.mulf %cst_41, %74 : f32
      %76 = vector.broadcast %75 : f32 to vector<64x128xf32>
      %77 = arith.mulf %67, %76 : vector<64x128xf32>
      %78 = arith.truncf %77 : vector<64x128xf32> to vector<64x128xbf16>
      %c0_42 = arith.constant 0 : index
      %c0_43 = arith.constant 0 : index
      %79 = vector.load %arg7[%c0_42, %c0_43] : memref<128x128xbf16, #tpu.memory_space<vmem>>, vector<128x128xbf16>
      %cst_44 = arith.constant dense<0.000000e+00> : vector<64x128xf32>
      %80 = tpu.matmul %78, %79, %cst_44 {dimension_numbers = #tpu.dot_dimension_numbers<[1], [0], [0], [1], [0, 0, 1, 1], [], []>} : vector<64x128xbf16>, vector<128x128xbf16>, vector<64x128xf32> -> vector<64x128xf32>
      %c0_45 = arith.constant 0 : index
      %c0_46 = arith.constant 0 : index
      %81 = vector.load %arg8[%c0_45, %c0_46] : memref<1x128xf32, #tpu.memory_space<vmem>>, vector<1x128xf32>
      %82 = vector.broadcast %81 : vector<1x128xf32> to vector<64x128xf32>
      %83 = arith.addf %80, %82 : vector<64x128xf32>
      %84 = arith.mulf %83, %83 : vector<64x128xf32>
      %cst_47 = arith.constant dense<0.000000e+00> : vector<64xf32>
      %85 = vector.multi_reduction <add>, %84, %cst_47 [1] : vector<64x128xf32> to vector<64xf32>
      %86 = vector.shape_cast %85 : vector<64xf32> to vector<64x1xf32>
      %cst_48 = arith.constant 1.000000e-24 : f32
      %87 = vector.broadcast %cst_48 : f32 to vector<64x1xf32>
      %88 = arith.maximumf %86, %87 : vector<64x1xf32>
      %89 = math.rsqrt %88 : vector<64x1xf32>
      %90 = vector.broadcast %89 : vector<64x1xf32> to vector<64x128xf32>
      %91 = arith.mulf %83, %90 : vector<64x128xf32>
      %92 = arith.truncf %91 : vector<64x128xf32> to vector<64x128xbf16>
      %c0_49 = arith.constant 0 : index
      %c0_50 = arith.constant 0 : index
      %93 = vector.load %arg10[%c0_49, %c0_50] : memref<64x128xbf16, #tpu.memory_space<vmem>>, vector<64x128xbf16>
      %cst_51 = arith.constant dense<0.000000e+00> : vector<64x64xf32>
      %94 = tpu.matmul %92, %93, %cst_51 {dimension_numbers = #tpu.dot_dimension_numbers<[1], [1], [0], [0], [0, 0, 1, 0], [], []>} : vector<64x128xbf16>, vector<64x128xbf16>, vector<64x64xf32> -> vector<64x64xf32>
      %cst_52 = arith.constant 3.000000e+01 : f32
      %95 = vector.broadcast %cst_52 : f32 to vector<64x64xf32>
      %96 = arith.mulf %95, %94 : vector<64x64xf32>
      %cst_53 = arith.constant dense<0xFF800000> : vector<64xf32>
      %97 = vector.multi_reduction <maximumf>, %96, %cst_53 [1] : vector<64x64xf32> to vector<64xf32>
      %98 = vector.shape_cast %97 : vector<64xf32> to vector<64x1xf32>
      %99 = vector.broadcast %98 : vector<64x1xf32> to vector<64x64xf32>
      %100 = arith.subf %96, %99 : vector<64x64xf32>
      %101 = math.exp %100 : vector<64x64xf32>
      %cst_54 = arith.constant dense<0.000000e+00> : vector<64xf32>
      %102 = vector.multi_reduction <add>, %101, %cst_54 [1] : vector<64x64xf32> to vector<64xf32>
      %103 = vector.shape_cast %102 : vector<64xf32> to vector<64x1xf32>
      %104 = tpu.reciprocal %103 {approx = true} : vector<64x1xf32> -> vector<64x1xf32>
      %105 = vector.broadcast %104 : vector<64x1xf32> to vector<64x64xf32>
      %106 = arith.mulf %101, %105 : vector<64x64xf32>
      %107 = arith.truncf %106 : vector<64x64xf32> to vector<64x64xbf16>
      %c0_55 = arith.constant 0 : index
      %c0_56 = arith.constant 0 : index
      %108 = vector.load %arg12[%c0_55, %c0_56] : memref<64x128xbf16, #tpu.memory_space<vmem>>, vector<64x128xbf16>
      %cst_57 = arith.constant dense<0.000000e+00> : vector<64x128xf32>
      %109 = tpu.matmul %107, %108, %cst_57 {dimension_numbers = #tpu.dot_dimension_numbers<[1], [0], [0], [1], [0, 0, 1, 1], [], []>} : vector<64x64xbf16>, vector<64x128xbf16>, vector<64x128xf32> -> vector<64x128xf32>
      %110 = arith.mulf %77, %109 : vector<64x128xf32>
      %111 = arith.mulf %110, %110 : vector<64x128xf32>
      %112 = vector.shape_cast %111 : vector<64x128xf32> to vector<1x64x128xf32>
      %cst_58 = arith.constant dense<0.000000e+00> : vector<1xf32>
      %113 = vector.multi_reduction <add>, %112, %cst_58 [1, 2] : vector<1x64x128xf32> to vector<1xf32>
      %114 = vector.shape_cast %113 : vector<1xf32> to vector<1x1x1xf32>
      %115 = vector.extract %114[0, 0, 0] : f32 from vector<1x1x1xf32>
      %cst_59 = arith.constant 9.99999974E-6 : f32
      %116 = arith.addf %115, %cst_59 : f32
      %117 = math.rsqrt %116 : f32
      %cst_60 = arith.constant 2.000000e+00 : f32
      %118 = arith.mulf %cst_60, %117 : f32
      %119 = vector.broadcast %118 : f32 to vector<64x128xf32>
      %120 = arith.mulf %110, %119 : vector<64x128xf32>
      %c0_61 = arith.constant 0 : index
      %c0_62 = arith.constant 0 : index
      %121 = vector.load %arg11[%c0_61, %c0_62] : memref<64x128xbf16, #tpu.memory_space<vmem>>, vector<64x128xbf16>
      %cst_63 = arith.constant dense<0.000000e+00> : vector<64x128xf32>
      %122 = tpu.matmul %107, %121, %cst_63 {dimension_numbers = #tpu.dot_dimension_numbers<[1], [0], [0], [1], [0, 0, 1, 1], [], []>} : vector<64x64xbf16>, vector<64x128xbf16>, vector<64x128xf32> -> vector<64x128xf32>
      %123 = arith.addf %77, %122 : vector<64x128xf32>
      %124 = arith.mulf %123, %123 : vector<64x128xf32>
      %125 = vector.shape_cast %124 : vector<64x128xf32> to vector<1x64x128xf32>
      %cst_64 = arith.constant dense<0.000000e+00> : vector<1xf32>
      %126 = vector.multi_reduction <add>, %125, %cst_64 [1, 2] : vector<1x64x128xf32> to vector<1xf32>
      %127 = vector.shape_cast %126 : vector<1xf32> to vector<1x1x1xf32>
      %128 = vector.extract %127[0, 0, 0] : f32 from vector<1x1x1xf32>
      %cst_65 = arith.constant 9.99999974E-6 : f32
      %129 = arith.addf %128, %cst_65 : f32
      %130 = math.rsqrt %129 : f32
      %cst_66 = arith.constant 2.000000e+00 : f32
      %131 = arith.mulf %cst_66, %130 : f32
      %132 = vector.broadcast %131 : f32 to vector<64x128xf32>
      %133 = arith.mulf %123, %132 : vector<64x128xf32>
      %134 = arith.addf %120, %133 : vector<64x128xf32>
      %135 = arith.mulf %134, %134 : vector<64x128xf32>
      %136 = vector.shape_cast %135 : vector<64x128xf32> to vector<1x64x128xf32>
      %cst_67 = arith.constant dense<0.000000e+00> : vector<1xf32>
      %137 = vector.multi_reduction <add>, %136, %cst_67 [1, 2] : vector<1x64x128xf32> to vector<1xf32>
      %138 = vector.shape_cast %137 : vector<1xf32> to vector<1x1x1xf32>
      %139 = vector.extract %138[0, 0, 0] : f32 from vector<1x1x1xf32>
      %cst_68 = arith.constant 9.99999974E-6 : f32
      %140 = arith.addf %139, %cst_68 : f32
      %141 = math.rsqrt %140 : f32
      %cst_69 = arith.constant 2.000000e+00 : f32
      %142 = arith.mulf %cst_69, %141 : f32
      %143 = vector.broadcast %142 : f32 to vector<64x128xf32>
      %144 = arith.mulf %134, %143 : vector<64x128xf32>
      scf.yield %144 : vector<64x128xf32>
    }
    %c0_23 = arith.constant 0 : index
    %c0_24 = arith.constant 0 : index
    %c0_25 = arith.constant 0 : index
    %31 = vector.load %arg9[%c0_23, %c0_24, %c0_25] : memref<1x64x128xf32, #tpu.memory_space<vmem>>, vector<1x64x128xf32>
    %32 = vector.shape_cast %31 : vector<1x64x128xf32> to vector<64x128xf32>
    %33 = vector.shape_cast %30 : vector<64x128xf32> to vector<1x64x128xf32>
    tpu.vector_store %arg9[%c0_23, %c0_24, %c0_25], %33 {strides = array<i32>} : memref<1x64x128xf32, #tpu.memory_space<vmem>>, vector<1x64x128xf32>,
    return
  }
  func.func @transform_0(%arg0: i32) -> (i32, i32, i32) {
    %c0_i32 = arith.constant 0 : i32
    %c0_i32_0 = arith.constant 0 : i32
    %c0_i32_1 = arith.constant 0 : i32
    return %arg0, %c0_i32, %c0_i32_0 : i32, i32, i32
  }
  func.func @transform_1(%arg0: i32) -> (i32, i32, i32) {
    %c0_i32 = arith.constant 0 : i32
    %c0_i32_0 = arith.constant 0 : i32
    %c0_i32_1 = arith.constant 0 : i32
    return %arg0, %c0_i32, %c0_i32_0 : i32, i32, i32
  }
  func.func @transform_2(%arg0: i32) -> (i32, i32, i32) {
    %c0_i32 = arith.constant 0 : i32
    %c0_i32_0 = arith.constant 0 : i32
    %c0_i32_1 = arith.constant 0 : i32
    return %arg0, %c0_i32, %c0_i32_0 : i32, i32, i32
  }
  func.func @transform_3(%arg0: i32) -> (i32, i32, i32) {
    %c0_i32 = arith.constant 0 : i32
    %c0_i32_0 = arith.constant 0 : i32
    %c0_i32_1 = arith.constant 0 : i32
    return %arg0, %c0_i32, %c0_i32_0 : i32, i32, i32
  }
  func.func @transform_4(%arg0: i32) -> (i32, i32) {
    %c0_i32 = arith.constant 0 : i32
    %c0_i32_0 = arith.constant 0 : i32
    %c0_i32_1 = arith.constant 0 : i32
    return %c0_i32, %c0_i32_0 : i32, i32
  }
  func.func @transform_5(%arg0: i32) -> (i32, i32) {
    %c0_i32 = arith.constant 0 : i32
    %c0_i32_0 = arith.constant 0 : i32
    %c0_i32_1 = arith.constant 0 : i32
    return %c0_i32, %c0_i32_0 : i32, i32
  }
  func.func @transform_6(%arg0: i32) -> (i32, i32) {
    %c0_i32 = arith.constant 0 : i32
    %c0_i32_0 = arith.constant 0 : i32
    %c0_i32_1 = arith.constant 0 : i32
    return %c0_i32, %c0_i32_0 : i32, i32
  }
  func.func @transform_7(%arg0: i32) -> (i32, i32) {
    %c0_i32 = arith.constant 0 : i32
    %c0_i32_0 = arith.constant 0 : i32
    %c0_i32_1 = arith.constant 0 : i32
    return %c0_i32, %c0_i32_0 : i32, i32
  }
  func.func @transform_8(%arg0: i32) -> (i32, i32, i32) {
    %c0_i32 = arith.constant 0 : i32
    %c0_i32_0 = arith.constant 0 : i32
    %c0_i32_1 = arith.constant 0 : i32
    return %arg0, %c0_i32, %c0_i32_0 : i32, i32, i32
  }
}

</mosaic_0001>

<bundles_post_ra>
// kernel: transformer_embed_decoder.1
= control target key start
LH: loop header
LB: loop body
LE: loop exit
PB: predicated region body
PF: predicated region fallthrough
CT: control target
= control target key end

     0   :  { %s2633_s27 = smov 0   ;;  %s3373_s0 = inlined_call_operand.vmem [shape: f32[2,64,128], index: 0, kind: input, shape index: {}]   ;;  %s3374_s1 = inlined_call_operand.vmem [shape: f32[2,64,128], index: 1, kind: input, shape index: {}]   ;;  %s3375_s2 = inlined_call_operand.vmem [shape: f32[2,64,128], index: 2, kind: input, shape index: {}]   ;;  %s3376_s3 = inlined_call_operand.vmem [shape: f32[2,64,128], index: 3, kind: input, shape index: {}]   ;;  %s3377_s4 = inlined_call_operand.vmem [shape: bf16[128,128], index: 4, kind: input, shape index: {}]   ;;  %s3378_s5 = inlined_call_operand.vmem [shape: f32[1,128], index: 5, kind: input, shape index: {}]   ;;  %s3379_s6 = inlined_call_operand.vmem [shape: bf16[128,128], index: 6, kind: input, shape index: {}]   ;;  %s3380_s7 = inlined_call_operand.vmem [shape: f32[1,128], index: 7, kind: input, shape index: {}]   ;;  %s3381_s8 = inlined_call_operand.vmem [shape: f32[2,64,128], index: 8, kind: output, shape index: {}]  }
   0x1 LB: > { %s1970_s28 = sadd.s32 4294967295, %s2550_s27   ;;  %p1974_p0 = scmp.ge.s32.totalorder %s2550_s27, 1  ;;  %s2550_s27 = sphi %s2633_s27, %s18_s27  }
   0x2   : > { %p292_p1 = scmp.lt.s32.totalorder %s2550_s27, 3 }
   0x4   : > { %p293_p2 = pnand %p1974_p0, %p292_p1 }
   0x5   : > { %p341_p3 = scmp.lt.s32.totalorder (!%p293_p2), %s1970_s28, 1  ;;  %s2868_s20 = smov (!%p293_p2), 0  }
   0x6   : > { %296 = sbr.rel (%p293_p2) target bundleno = 3031 (0xbd7), region = 52 }
   0xb   : > { %v2155_v0 = vld [vmem:[%s3379_s6 + $0x38] sm:$0xff]  ;;  %v2154_v1 = vld [vmem:[%s3379_s6 + $0x30] sm:$0xff]  ;;  %s3397_s28 = smov (!%p341_p3, %s1970_s28), 1  ;;  %v2153_v2 = vld [vmem:[%s3379_s6 + $0x28] sm:$0xff] }
   0xc   : > { %455 = vmatpush.bf16.msra.mxu0 %v2155_v0  ;;  %2253 = vmatpush.bf16.msra.mxu1 %v2155_v0  ;;  %s2143_s11 = sshll.u32 %s3397_s28, 6  ;;  %v2152_v9 = vld [vmem:[%s3379_s6 + $0x20] sm:$0xff]  ;;  %v2151_v32 = vld [vmem:[%s3379_s6 + $0x18] sm:$0xff]  ;;  %v2150_v50 = vld [vmem:[%s3379_s6 + $0x10] sm:$0xff] }
   0xd   : > { %2254 = vmatpush.bf16.msra.mxu2 %v2155_v0  ;;  %2255 = vmatpush.bf16.msra.mxu3 %v2155_v0  ;;  %s350_s16 = scalar_lea.vmem %s3374_s1, %s2143_s11  ;;  %s2656_s19 = scalar_lea.vmem %s3375_s2, %s2143_s11  ;;  %v2149_v54 = vld [vmem:[%s3379_s6 + $0x8] sm:$0xff]  ;;  %v2148_v55 = vld [vmem:[%s3379_s6] sm:$0xff] }
   0xe   : > { %s2661_s22 = scalar_lea.vmem %s3376_s3, %s2143_s11  ;;  %v2663_v3 = vld [vmem:[%s350_s16] sm:$0xff]  ;;  %v2665_v4 = vld [vmem:[%s350_s16 + $0x8] sm:$0xff]  ;;  %v2667_v5 = vld [vmem:[%s350_s16 + $0x10] sm:$0xff]  ;;  %s345_s25 = scalar_lea.vmem %s3373_s0, %s2143_s11 }
   0xf   : > { %s2675_s29 = scalar_lea.vmem %s3381_s8, %s2143_s11  ;;  %v2678_v6 = vld [vmem:[%s2656_s19] sm:$0xff]  ;;  %v2681_v7 = vld [vmem:[%s2656_s19 + $0x8] sm:$0xff]  ;;  %v2689_v12 = vld [vmem:[%s350_s16 + $0x18] sm:$0xff] }
  0x10   : > { %456 = vmatpush.bf16.msra.mxu0 %v2154_v1  ;;  %2256 = vmatpush.bf16.msra.mxu1 %v2154_v1  ;;  %v375_v8 = vld [vmem:[%s2661_s22] sm:$0xff]  ;;  %v376_v10 = vld [vmem:[%s2661_s22 + $0x8] sm:$0xff]  ;;  %v2696_v17 = vld [vmem:[%s350_s16 + $0x30] sm:$0xff]  ;;  %v383_v56 = vpack.c.bf16 %v2681_v7, %v2678_v6 }
  0x11   : > { %2257 = vmatpush.bf16.msra.mxu2 %v2154_v1  ;;  %2258 = vmatpush.bf16.msra.mxu3 %v2154_v1  ;;  %v620_v11 = vmul.f32 %v375_v8, %v2678_v6  ;;  %v2691_v13 = vld [vmem:[%s350_s16 + $0x20] sm:$0xff]  ;;  %v621_v14 = vmul.f32 %v376_v10, %v2681_v7  ;;  %v2227_v15 = vpack.c.bf16 %v376_v10, %v375_v8  ;;  %v2694_v16 = vld [vmem:[%s350_s16 + $0x28] sm:$0xff]  ;;  %v2698_v18 = vld [vmem:[%s350_s16 + $0x38] sm:$0xff] }
  0x12   : > { %v2700_v19 = vld [vmem:[%s345_s25] sm:$0xff]   ;;  %v2702_v20 = vld [vmem:[%s345_s25 + $0x8] sm:$0xff]   ;;  %v2704_v21 = vld [vmem:[%s345_s25 + $0x10] sm:$0xff]  }
  0x13   : > { %v2207_v22 = vpack.c.bf16 %v621_v14, %v620_v11  ;;  %2228 = vst [vmem:[#allocation4] sm:$0xff] %v2227_v15   ;;  %v2706_v23 = vld [vmem:[%s345_s25 + $0x18] sm:$0xff]   ;;  %v2708_v24 = vld [vmem:[%s345_s25 + $0x20] sm:$0xff]   ;;  %v2710_v25 = vld [vmem:[%s345_s25 + $0x28] sm:$0xff]  }
  0x14   : > { %457 = vmatpush.bf16.msra.mxu0 %v2153_v2  ;;  %2259 = vmatpush.bf16.msra.mxu1 %v2153_v2  ;;  %v2712_v26 = vld [vmem:[%s345_s25 + $0x30] sm:$0xff]   ;;  %v2714_v27 = vld [vmem:[%s345_s25 + $0x38] sm:$0xff]   ;;  %v371_v35 = vld [vmem:[%s2656_s19 + $0x20] sm:$0xff] }
  0x15   : > { %2260 = vmatpush.bf16.msra.mxu2 %v2153_v2  ;;  %2261 = vmatpush.bf16.msra.mxu3 %v2153_v2  ;;  %v369_v28 = vld [vmem:[%s2656_s19 + $0x10] sm:$0xff]  ;;  %2208 = vst [vmem:[#allocation3] sm:$0xff] %v2207_v22   ;;  %v370_v29 = vld [vmem:[%s2656_s19 + $0x18] sm:$0xff]  ;;  %v379_v36 = vld [vmem:[%s2661_s22 + $0x20] sm:$0xff] }
  0x16   : > { %v377_v30 = vld [vmem:[%s2661_s22 + $0x10] sm:$0xff]  ;;  %v378_v31 = vld [vmem:[%s2661_s22 + $0x18] sm:$0xff]  ;;  %v372_v38 = vld [vmem:[%s2656_s19 + $0x28] sm:$0xff]  ;;  %v624_v40 = vmul.f32 %v379_v36, %v371_v35  ;;  %v384_v57 = vpack.c.bf16 %v370_v29, %v369_v28 }
  0x17   : > { %v622_v33 = vmul.f32 %v377_v30, %v369_v28  ;;  %v623_v34 = vmul.f32 %v378_v31, %v370_v29  ;;  %v2232_v37 = vpack.c.bf16 %v378_v31, %v377_v30  ;;  %v380_v39 = vld [vmem:[%s2661_s22 + $0x28] sm:$0xff]  ;;  %v373_v41 = vld [vmem:[%s2656_s19 + $0x30] sm:$0xff]  ;;  %v374_v45 = vld [vmem:[%s2656_s19 + $0x38] sm:$0xff]  ;;  %v385_v58 = vpack.c.bf16 %v372_v38, %v371_v35 }
  0x18   : > { %458 = vmatpush.bf16.msra.mxu0 %v2152_v9  ;;  %2262 = vmatpush.bf16.msra.mxu1 %v2152_v9  ;;  %v625_v43 = vmul.f32 %v380_v39, %v372_v38  ;;  %v2237_v44 = vpack.c.bf16 %v380_v39, %v379_v36  ;;  %v381_v46 = vld [vmem:[%s2661_s22 + $0x30] sm:$0xff]  ;;  %v382_v47 = vld [vmem:[%s2661_s22 + $0x38] sm:$0xff]  ;;  %v386_v59 = vpack.c.bf16 %v374_v45, %v373_v41  ;;  %v2385_v60 = vld [vmem:[%s3380_s7] ss:$0 sm:$0xff] }
  0x19   : > { %2263 = vmatpush.bf16.msra.mxu2 %v2152_v9  ;;  %2264 = vmatpush.bf16.msra.mxu3 %v2152_v9  ;;  %v2212_v42 = vpack.c.bf16 %v623_v34, %v622_v33  ;;  %2250 = vst [vmem:[#allocation4 + $0x8] sm:$0xff] %v2232_v37   ;;  %v626_v48 = vmul.f32 %v381_v46, %v373_v41 }
  0x1a   : > { %v627_v49 = vmul.f32 %v382_v47, %v374_v45  ;;  %v2217_v51 = vpack.c.bf16 %v625_v43, %v624_v40  ;;  %v2242_v52 = vpack.c.bf16 %v382_v47, %v381_v46  ;;  %2251 = vst [vmem:[#allocation4 + $0x10] sm:$0xff] %v2237_v44  }
  0x1b   : > { %2247 = vst [vmem:[#allocation3 + $0x18] sm:$0xff] %v2212_v42  }
  0x1c   : > { %459 = vmatpush.bf16.msra.mxu0 %v2151_v32  ;;  %2265 = vmatpush.bf16.msra.mxu1 %v2151_v32  ;;  %v2222_v53 = vpack.c.bf16 %v627_v49, %v626_v48  ;;  %2248 = vst [vmem:[#allocation3 + $0x8] sm:$0xff] %v2217_v51  }
  0x1d   : > { %2266 = vmatpush.bf16.msra.mxu2 %v2151_v32  ;;  %2267 = vmatpush.bf16.msra.mxu3 %v2151_v32  ;;  %2252 = vst [vmem:[#allocation4 + $0x18] sm:$0xff] %v2242_v52  }
  0x1e   : > { %2249 = vst [vmem:[#allocation3 + $0x10] sm:$0xff] %v2222_v53  }
  0x20   : > { %460 = vmatpush.bf16.msra.mxu0 %v2150_v50  ;;  %2268 = vmatpush.bf16.msra.mxu1 %v2150_v50 }
  0x21   : > { %2269 = vmatpush.bf16.msra.mxu2 %v2150_v50  ;;  %2270 = vmatpush.bf16.msra.mxu3 %v2150_v50 }
  0x24   : > { %461 = vmatpush.bf16.msra.mxu0 %v2149_v54  ;;  %2271 = vmatpush.bf16.msra.mxu1 %v2149_v54 }
  0x25   : > { %2272 = vmatpush.bf16.msra.mxu2 %v2149_v54  ;;  %2273 = vmatpush.bf16.msra.mxu3 %v2149_v54 }
  0x28   : > { %462 = vmatpush.bf16.msra.mxu0 %v2148_v55  ;;  %2274 = vmatpush.bf16.msra.mxu1 %v2148_v55 }
  0x29   : > { %2275 = vmatpush.bf16.msra.mxu2 %v2148_v55  ;;  %2276 = vmatpush.bf16.msra.mxu3 %v2148_v55 }
  0x2b   : > { %463 = vmatmul.bf16.vlgmr.msra.gmra.mxu0 %v383_v56  ;;  %468 = vmatmul.bf16.vlgmr.msra.gmra.mxu1 %v384_v57 }
  0x2c   : > { %473 = vmatmul.bf16.vlgmr.msra.gmra.mxu2 %v385_v58  ;;  %478 = vmatmul.bf16.vlgmr.msra.gmra.mxu3 %v386_v59 }
  0xa8   : > { %v464_v61 = vpop.f32.mrf.mxu0  ;;  %v469_v62 = vpop.f32.mrf.mxu1 }
  0xa9   : > { %v2745_v63 = vadd.f32 %v2385_v60, %v464_v61  ;;  %v2747_v0 = vadd.f32 %v2385_v60, %v469_v62 }
  0xab   : > { %v486_v1 = vmul.f32 %v2747_v0, %v2747_v0  ;;  %v484_v2 = vmul.f32 %v2745_v63, %v2745_v63 }
  0xad   : > { %496 = vadd.xlane.f32.xlu1 %v486_v1  ;;  %492 = vadd.xlane.f32.xlu0 %v484_v2 }
  0xaf   : > { %v474_v6 = vpop.f32.mrf.mxu2  ;;  %v479_v7 = vpop.f32.mrf.mxu3 }
  0xb0   : > { %v2753_v8 = vadd.f32 %v2385_v60, %v474_v6  ;;  %v466_v9 = vpop.f32.mrf.mxu0  ;;  %v471_v10 = vpop.f32.mrf.mxu1  ;;  %v2765_v29 = vadd.f32 %v2385_v60, %v479_v7 }
  0xb1   : > { %v2755_v11 = vadd.f32 %v2385_v60, %v466_v9  ;;  %v2757_v14 = vadd.f32 %v2385_v60, %v471_v10 }
  0xb2   : > { %v488_v15 = vmul.f32 %v2753_v8, %v2753_v8  ;;  %v490_v36 = vmul.f32 %v2765_v29, %v2765_v29 }
  0xb3   : > { %v487_v22 = vmul.f32 %v2757_v14, %v2757_v14  ;;  %v485_v28 = vmul.f32 %v2755_v11, %v2755_v11 }
  0xb4   : > { %500 = vadd.xlane.f32.xlu2 %v488_v15 }
  0xb5   : > { %498 = vadd.xlane.f32.xlu1 %v487_v22  ;;  %494 = vadd.xlane.f32.xlu0 %v485_v28 }
  0xb7   : > { %v476_v30 = vpop.f32.mrf.mxu2  ;;  %v481_v31 = vpop.f32.mrf.mxu3 }
  0xb8   : > { %v2767_v32 = vadd.f32 %v2385_v60, %v476_v30  ;;  %v2769_v33 = vadd.f32 %v2385_v60, %v481_v31 }
  0xba   : > { %v489_v34 = vmul.f32 %v2767_v32, %v2767_v32  ;;  %v491_v35 = vmul.f32 %v2769_v33, %v2769_v33 }
  0xbc   : > { %502 = vadd.xlane.f32.xlu2 %v489_v34 }
  0xbd   : > { %506 = vadd.xlane.f32.xlu1 %v491_v35  ;;  %504 = vadd.xlane.f32.xlu0 %v490_v36 }
 0x120   : > { %v497_v37 = vpop.xlane.xlu1 %496  ;;  %v493_v38 = vpop.xlane.xlu0 %492 }
 0x121   : > { %v510_v39 = vmax.f32 %v497_v37, 1e-24  ;;  %v508_v40 = vmax.f32 %v493_v38, 1e-24 }
 0x123   : > { %2386 = vrsqrt.f32 %v510_v39  ;;  %vm542_vm1 = vweird.f32 %v510_v39  ;;  %vm522_vm2 = vweird.f32 %v508_v40 }
 0x124   : > { %2388 = vrsqrt.f32 %v508_v40 }
 0x127   : > { %v501_v41 = vpop.xlane.xlu2 %500 }
 0x128   : > { %v2777_v42 = vmax.f32 %v501_v41, 1e-24  ;;  %v499_v43 = vpop.xlane.xlu1 %498  ;;  %v495_v44 = vpop.xlane.xlu0 %494 }
 0x129   : > { %v2387_v45 = vpop.eup %2386  ;;  %v511_v46 = vmax.f32 %v499_v43, 1e-24  ;;  %v2779_v47 = vmax.f32 %v495_v44, 1e-24 }
 0x12a   : > { %v2781_v48 = vpop.eup %2388  ;;  %v537_v49 = vmul.f32 %v2387_v45, %v510_v39  ;;  %2390 = vrsqrt.f32 %v2777_v42  ;;  %vm543_vm0 = vweird.f32 %v2387_v45  ;;  %vm562_vm13 = vweird.f32 %v2777_v42 }
 0x12b   : > { %v517_v50 = vmul.f32 %v2781_v48, %v508_v40  ;;  %2392 = vrsqrt.f32 %v511_v46  ;;  %vm523_vm3 = vweird.f32 %v2781_v48  ;;  %vm2803_vm4 = vmor %vm542_vm1, %vm543_vm0  ;;  %vm552_vm8 = vweird.f32 %v511_v46 }
 0x12c   : > { %v538_v51 = vmul.f32 %v2387_v45, %v537_v49  ;;  %2394 = vrsqrt.f32 %v2779_v47  ;;  %vm2811_vm7 = vmor %vm522_vm2, %vm523_vm3  ;;  %vm532_vm9 = vweird.f32 %v2779_v47 }
 0x12d   : > { %v518_v52 = vmul.f32 %v2781_v48, %v517_v50 }
 0x12e   : > { %v539_v53 = vmul.f32 0.5, %v538_v51 }
 0x12f   : > { %v519_v54 = vmul.f32 0.5, %v518_v52  ;;  %v503_v55 = vpop.xlane.xlu2 %502 }
 0x130   : > { %v2787_v56 = vpop.eup %2390  ;;  %v2789_v57 = vmax.f32 %v503_v55, 1e-24  ;;  %v507_v58 = vpop.xlane.xlu1 %506  ;;  %v540_v60 = vsub.f32 1.5, %v539_v53 }
 0x131   : > { %v2393_v59 = vpop.eup %2392  ;;  %v557_v61 = vmul.f32 %v2787_v56, %v2777_v42  ;;  %v2793_v62 = vmax.f32 %v507_v58, 1e-24  ;;  %v520_v6 = vsub.f32 1.5, %v519_v54  ;;  %v505_v10 = vpop.xlane.xlu0 %504  ;;  %vm563_vm11 = vweird.f32 %v2787_v56 }
 0x132   : > { %v2395_v1 = vpop.eup %2394  ;;  %v547_v2 = vmul.f32 %v2393_v59, %v511_v46  ;;  %2396 = vrsqrt.f32 %v2789_v57  ;;  %v541_v22 = vmul.f32 %v2387_v45, %v540_v60  ;;  %v2799_v34 = vmax.f32 %v505_v10, 1e-24  ;;  %vm2828_vm15 = vmor %vm562_vm13, %vm563_vm11 }
 0x133   : > { %v558_v7 = vmul.f32 %v2787_v56, %v557_v61  ;;  %v527_v9 = vmul.f32 %v2395_v1, %v2779_v47  ;;  %2398 = vrsqrt.f32 %v2793_v62  ;;  %v521_v35 = vmul.f32 %v2781_v48, %v520_v6 }
 0x134   : > { %v548_v15 = vmul.f32 %v2393_v59, %v547_v2  ;;  %vm553_vm5 = vweird.f32 %v2393_v59  ;;  %2400 = vrsqrt.f32 %v2799_v34  ;;  %v545_v39 = vsel %vm2803_vm4, %v2387_v45, %v541_v22 }
 0x135   : > { %v559_v28 = vmul.f32 0.5, %v558_v7  ;;  %v528_v30 = vmul.f32 %v2395_v1, %v527_v9  ;;  %vm533_vm6 = vweird.f32 %v2395_v1  ;;  %v525_v52 = vsel %vm2811_vm7, %v2781_v48, %v521_v35  ;;  %vm554_vm10 = vmor %vm552_vm8, %vm553_vm5 }
 0x136   : > { %v549_v31 = vmul.f32 0.5, %v548_v15  ;;  %v598_v55 = vmul.f32 %v545_v39, %v2747_v0  ;;  %vm534_vm12 = vmor %vm532_vm9, %vm533_vm6  ;;  %v596_v6 = vmul.f32 %v525_v52, %v2745_v63  ;;  %vm572_vm0 = vweird.f32 %v2789_v57 }
 0x137   : > { %v529_v36 = vmul.f32 0.5, %v528_v30  ;;  %v560_v41 = vsub.f32 1.5, %v559_v28  ;;  %vm592_vm3 = vweird.f32 %v2793_v62  ;;  %vm582_vm6 = vweird.f32 %v2799_v34 }
 0x138   : > { %v2397_v37 = vpop.eup %2396  ;;  %v550_v43 = vsub.f32 1.5, %v549_v31 }
 0x139   : > { %v530_v44 = vsub.f32 1.5, %v529_v36  ;;  %v567_v40 = vmul.f32 %v2397_v37, %v2789_v57  ;;  %v2399_v49 = vpop.eup %2398  ;;  %v561_v58 = vmul.f32 %v2787_v56, %v560_v41  ;;  %vm573_vm14 = vweird.f32 %v2397_v37 }
 0x13a   : > { %v551_v51 = vmul.f32 %v2393_v59, %v550_v43  ;;  %v587_v54 = vmul.f32 %v2399_v49, %v2793_v62  ;;  %v2401_v48 = vpop.eup %2400  ;;  %vm593_vm1 = vweird.f32 %v2399_v49  ;;  %vm574_vm2 = vmor %vm572_vm0, %vm573_vm14 }
 0x13b   : > { %v531_v53 = vmul.f32 %v2395_v1, %v530_v44  ;;  %v568_v45 = vmul.f32 %v2397_v37, %v567_v40  ;;  %vm594_vm4 = vmor %vm592_vm3, %vm593_vm1  ;;  %vm583_vm5 = vweird.f32 %v2401_v48 }
 0x13c   : > { %v555_v60 = vsel %vm554_vm10, %v2393_v59, %v551_v51  ;;  %v588_v2 = vmul.f32 %v2399_v49, %v587_v54  ;;  %vm584_vm7 = vmor %vm582_vm6, %vm583_vm5 }
 0x13d   : > { %v599_v46 = vmul.f32 %v555_v60, %v2757_v14  ;;  %v535_v47 = vsel %vm534_vm12, %v2395_v1, %v531_v53  ;;  %v569_v61 = vmul.f32 0.5, %v568_v45  ;;  %v577_v14 = vmul.f32 %v2401_v48, %v2799_v34 }
 0x13e   : > { %v597_v7 = vmul.f32 %v535_v47, %v2755_v11  ;;  %v589_v10 = vmul.f32 0.5, %v588_v2  ;;  %v565_v1 = vsel %vm2828_vm15, %v2787_v56, %v561_v58 }
 0x13f   : > { %v2192_v59 = vpack.c.bf16 %v599_v46, %v598_v55  ;;  %v570_v9 = vsub.f32 1.5, %v569_v61  ;;  %v578_v42 = vmul.f32 %v2401_v48, %v577_v14  ;;  %v600_v31 = vmul.f32 %v565_v1, %v2753_v8 }
 0x140   : > { %v2187_v15 = vpack.c.bf16 %v597_v7, %v596_v6  ;;  %v590_v11 = vsub.f32 1.5, %v589_v10 }
 0x141   : > { %2244 = vst [vmem:[#allocation2] sm:$0xff] %v2192_v59   ;;  %v571_v63 = vmul.f32 %v2397_v37, %v570_v9  ;;  %v579_v30 = vmul.f32 0.5, %v578_v42 }
 0x142   : > { %2188 = vst [vmem:[#allocation2 + $0x10] sm:$0xff] %v2187_v15   ;;  %v591_v28 = vmul.f32 %v2399_v49, %v590_v11 }
 0x143   : > { %v575_v22 = vsel %vm574_vm2, %v2397_v37, %v571_v63  ;;  %v580_v57 = vsub.f32 1.5, %v579_v30 }
 0x144   : > { %v601_v56 = vmul.f32 %v575_v22, %v2767_v32  ;;  %v595_v35 = vsel %vm594_vm4, %v2399_v49, %v591_v28 }
 0x145   : > { %v581_v38 = vmul.f32 %v2401_v48, %v580_v57  ;;  %v603_v41 = vmul.f32 %v595_v35, %v2769_v33 }
 0x146   : > { %v2197_v36 = vpack.c.bf16 %v601_v56, %v600_v31 }
 0x147   : > { %v585_v37 = vsel %vm584_vm7, %v2401_v48, %v581_v38 }
 0x148   : > { %2245 = vst [vmem:[#allocation2 + $0x18] sm:$0xff] %v2197_v36   ;;  %v602_v62 = vmul.f32 %v585_v37, %v2765_v29 }
 0x14a   : > { %v2202_v43 = vpack.c.bf16 %v603_v41, %v602_v62 }
 0x14c   : > { %2246 = vst [vmem:[#allocation2 + $0x8] sm:$0xff] %v2202_v43  }
 0x14d LB: >> { %v2163_v8 = vld [vmem:[%s3377_s4 + $0x38] sm:$0xff]  ;;  %v2162_v29 = vld [vmem:[%s3377_s4 + $0x30] sm:$0xff]  ;;  %v2161_v32 = vld [vmem:[%s3377_s4 + $0x28] sm:$0xff]  ;;  %v692_v39 = vmul.f32 0.001, %v2667_v5  ;;  %s681_s20 = sadd.s32 1, %s2586_s20   ;;  %s2586_s20 = sphi %s2868_s20, %s681_s20   ;;  %v2582_v19 = vphi %v2700_v19, %v3395_v19   ;;  %v2578_v20 = vphi %v2702_v20, %v3394_v20   ;;  %v2574_v21 = vphi %v2704_v21, %v3393_v21   ;;  %v2570_v23 = vphi %v2706_v23, %v3392_v23   ;;  %v2566_v24 = vphi %v2708_v24, %v3391_v24   ;;  %v2562_v25 = vphi %v2710_v25, %v3390_v25   ;;  %v2558_v26 = vphi %v2712_v26, %v3389_v26   ;;  %v2554_v27 = vphi %v2714_v27, %v3388_v27  }
 0x14e   : >> { %2277 = vmatpush.bf16.msra.mxu3 %v2163_v8  ;;  %778 = vmatpush.bf16.msra.mxu0 %v2163_v8  ;;  %v2160_v33 = vld [vmem:[%s3377_s4 + $0x20] sm:$0xff]  ;;  %v2159_v34 = vld [vmem:[%s3377_s4 + $0x18] sm:$0xff]  ;;  %v2158_v44 = vld [vmem:[%s3377_s4 + $0x10] sm:$0xff]  ;;  %v693_v40 = vmul.f32 0.001, %v2689_v12  ;;  %p678_p4 = scmp.ge.s32.totalorder %s681_s20, 6  }
 0x14f   : >> { %v694_v49 = vmul.f32 0.001, %v2691_v13  ;;  %v696_v50 = vmul.f32 0.001, %v2696_v17  ;;  %v697_v51 = vmul.f32 0.001, %v2698_v18  ;;  %v2914_v60 = vadd.f32 %v2574_v21, %v692_v39 }
 0x150   : >> { %v695_v52 = vmul.f32 0.001, %v2694_v16  ;;  %v690_v53 = vmul.f32 0.001, %v2663_v3  ;;  %v691_v45 = vmul.f32 0.001, %v2665_v4  ;;  %v2916_v46 = vadd.f32 %v2570_v23, %v693_v40 }
 0x151   : >> { %v2157_v54 = vld [vmem:[%s3377_s4 + $0x8] sm:$0xff]  ;;  %v2910_v55 = vadd.f32 %v2558_v26, %v696_v50  ;;  %v2912_v58 = vadd.f32 %v2554_v27, %v697_v51  ;;  %v2918_v47 = vadd.f32 %v2566_v24, %v694_v49  ;;  %v2156_v26 = vld [vmem:[%s3377_s4] sm:$0xff] }
 0x152   : >> { %2278 = vmatpush.bf16.msra.mxu3 %v2162_v29  ;;  %779 = vmatpush.bf16.msra.mxu0 %v2162_v29  ;;  %v2920_v61 = vadd.f32 %v2562_v25, %v695_v52  ;;  %v2922_v2 = vadd.f32 %v2582_v19, %v690_v53  ;;  %v2924_v48 = vadd.f32 %v2578_v20, %v691_v45  ;;  %v2402_v20 = vld [vmem:[%s3378_s5] ss:$0 sm:$0xff] }
 0x153   : >> { %v709_v6 = vpack.c.bf16 %v2912_v58, %v2910_v55  ;;  %v707_v21 = vpack.c.bf16 %v2916_v46, %v2914_v60 }
 0x154   : >> { %v708_v23 = vpack.c.bf16 %v2920_v61, %v2918_v47  ;;  %v706_v19 = vpack.c.bf16 %v2924_v48, %v2922_v2 }
 0x155   : >> { %1077 = vmatpush.bf16.msra.mxu2 %v709_v6 }
 0x156   : >> { %2279 = vmatpush.bf16.msra.mxu3 %v2161_v32  ;;  %780 = vmatpush.bf16.msra.mxu0 %v2161_v32 }
 0x159   : >> { %1078 = vmatpush.bf16.msra.mxu2 %v708_v23 }
 0x15a   : >> { %2280 = vmatpush.bf16.msra.mxu3 %v2160_v33  ;;  %781 = vmatpush.bf16.msra.mxu0 %v2160_v33 }
 0x15d   : >> { %1079 = vmatpush.bf16.msra.mxu2 %v707_v21 }
 0x15e   : >> { %2281 = vmatpush.bf16.msra.mxu3 %v2159_v34  ;;  %782 = vmatpush.bf16.msra.mxu0 %v2159_v34 }
 0x161   : >> { %1080 = vmatpush.bf16.msra.mxu2 %v706_v19 }
 0x162   : >> { %2282 = vmatpush.bf16.msra.mxu3 %v2158_v44  ;;  %783 = vmatpush.bf16.msra.mxu0 %v2158_v44 }
 0x166   : >> { %2283 = vmatpush.bf16.msra.mxu3 %v2157_v54  ;;  %784 = vmatpush.bf16.msra.mxu0 %v2157_v54 }
 0x16a   : >> { %2284 = vmatpush.bf16.msra.mxu3 %v2156_v26  ;;  %785 = vmatpush.bf16.msra.mxu0 %v2156_v26 }
 0x16d   : >> { %791 = vmatmul.bf16.vlgmr.msra.gmra.mxu3 %v707_v21  ;;  %786 = vmatmul.bf16.vlgmr.msra.gmra.mxu0 %v706_v19 }
 0x17d   : >> { %796 = vmatmul.bf16.gmra.mxu3 %v708_v23 }
 0x18d   : >> { %801 = vmatmul.bf16.gmra.mxu3 %v709_v6 }
 0x1ea   : >> { %v787_v10 = vpop.f32.mrf.mxu0 }
 0x1eb   : >> { %v2968_v38 = vadd.f32 %v2402_v20, %v787_v10 }
 0x1ed   : >> { %v807_v41 = vmul.f32 %v2968_v38, %v2968_v38 }
 0x1f0   : >> { %v792_v24 = vpop.f32.mrf.mxu3 }
 0x1f1   : >> { %v2940_v25 = vadd.f32 %v2402_v20, %v792_v24 }
 0x1f2   : >> { %v789_v11 = vpop.f32.mrf.mxu0 }
 0x1f3   : >> { %v809_v27 = vmul.f32 %v2940_v25, %v2940_v25  ;;  %v2956_v22 = vadd.f32 %v2402_v20, %v789_v11 }
 0x1f5   : >> { %819 = vadd.xlane.f32.xlu2 %v809_v27  ;;  %v808_v31 = vmul.f32 %v2956_v22, %v2956_v22 }
 0x1f8   : >> { %v794_v7 = vpop.f32.mrf.mxu3 }
 0x1f9   : >> { %v2944_v0 = vadd.f32 %v2402_v20, %v794_v7 }
 0x1fb   : >> { %v810_v59 = vmul.f32 %v2944_v0, %v2944_v0 }
 0x1fd   : >> { %821 = vadd.xlane.f32.xlu2 %v810_v59 }
 0x200   : >> { %v797_v9 = vpop.f32.mrf.mxu3 }
 0x201   : >> { %v2948_v14 = vadd.f32 %v2402_v20, %v797_v9 }
 0x203   : >> { %v811_v1 = vmul.f32 %v2948_v14, %v2948_v14 }
 0x205   : >> { %823 = vadd.xlane.f32.xlu1 %v811_v1 }
 0x208   : >> { %v799_v15 = vpop.f32.mrf.mxu3 }
 0x209   : >> { %v2952_v63 = vadd.f32 %v2402_v20, %v799_v15 }
 0x20b   : >> { %v812_v42 = vmul.f32 %v2952_v63, %v2952_v63 }
 0x20d   : >> { %825 = vadd.xlane.f32.xlu1 %v812_v42 }
 0x210   : >> { %v802_v28 = vpop.f32.mrf.mxu3 }
 0x211   : >> { %v2958_v30 = vadd.f32 %v2402_v20, %v802_v28 }
 0x213   : >> { %v813_v56 = vmul.f32 %v2958_v30, %v2958_v30 }
 0x215   : >> { %817 = vadd.xlane.f32.xlu1 %v808_v31  ;;  %827 = vadd.xlane.f32.xlu0 %v813_v56 }
 0x218   : >> { %v804_v35 = vpop.f32.mrf.mxu3 }
 0x219   : >> { %v2964_v57 = vadd.f32 %v2402_v20, %v804_v35 }
 0x21b   : >> { %v814_v36 = vmul.f32 %v2964_v57, %v2964_v57 }
 0x21d   : >> { %829 = vadd.xlane.f32.xlu0 %v814_v36 }
 0x225   : >> { %815 = vadd.xlane.f32.xlu0 %v807_v41 }
 0x268   : >> { %v820_v62 = vpop.xlane.xlu2 %819 }
 0x269   : >> { %v2980_v44 = vmax.f32 %v820_v62, 1e-24 }
 0x270   : >> { %v822_v34 = vpop.xlane.xlu2 %821 }
 0x271   : >> { %v2978_v39 = vmax.f32 %v822_v34, 1e-24 }
 0x273   : >> { %vm875_vm6 = vweird.f32 %v2978_v39 }
 0x278   : >> { %v824_v37 = vpop.xlane.xlu1 %823 }
 0x279   : >> { %v2974_v32 = vmax.f32 %v824_v37, 1e-24 }
 0x27b   : >> { %vm885_vm2 = vweird.f32 %v2974_v32 }
 0x280   : >> { %v826_v43 = vpop.xlane.xlu1 %825 }
 0x281   : >> { %v2972_v8 = vmax.f32 %v826_v43, 1e-24 }
 0x283   : >> { %2404 = vrsqrt.f32 %v2972_v8  ;;  %vm895_vm0 = vweird.f32 %v2972_v8 }
 0x288   : >> { %v828_v29 = vpop.xlane.xlu0 %827  ;;  %v818_v26 = vpop.xlane.xlu1 %817 }
 0x289   : >> { %v837_v33 = vmax.f32 %v828_v29, 1e-24  ;;  %v2982_v49 = vpop.eup %2404  ;;  %v2995_v27 = vmax.f32 %v818_v26, 1e-24 }
 0x28a   : >> { %v890_v45 = vmul.f32 %v2982_v49, %v2972_v8  ;;  %vm896_vm14 = vweird.f32 %v2982_v49 }
 0x28b   : >> { %2406 = vrsqrt.f32 %v837_v33  ;;  %vm905_vm9 = vweird.f32 %v837_v33  ;;  %vm897_vm1 = vmor %vm895_vm0, %vm896_vm14  ;;  %vm968_vm0 = vcmask 523264  }
 0x28c   : >> { %2408 = vrsqrt.f32 %v2974_v32  ;;  %v891_v19 = vmul.f32 %v2982_v49, %v890_v45 }
 0x28d   : >> { %2410 = vrsqrt.f32 %v2978_v39 }
 0x28e   : >> { %v892_v11 = vmul.f32 0.5, %v891_v19 }
 0x290   : >> { %v830_v40 = vpop.xlane.xlu0 %829  ;;  %v893_v41 = vsub.f32 1.5, %v892_v11 }
 0x291   : >> { %v838_v50 = vmax.f32 %v830_v40, 1e-24  ;;  %v2407_v51 = vpop.eup %2406 }
 0x292   : >> { %v2985_v52 = vpop.eup %2408  ;;  %v900_v53 = vmul.f32 %v2407_v51, %v837_v33  ;;  %vm906_vm8 = vweird.f32 %v2407_v51 }
 0x293   : >> { %2412 = vrsqrt.f32 %v838_v50  ;;  %v880_v6 = vmul.f32 %v2985_v52, %v2974_v32  ;;  %v2992_v23 = vpop.eup %2410  ;;  %vm907_vm11 = vmor %vm905_vm9, %vm906_vm8  ;;  %vm915_vm12 = vweird.f32 %v838_v50  ;;  %vm886_vm15 = vweird.f32 %v2985_v52 }
 0x294   : >> { %2414 = vrsqrt.f32 %v2980_v44  ;;  %v901_v54 = vmul.f32 %v2407_v51, %v900_v53  ;;  %v870_v15 = vmul.f32 %v2992_v23, %v2978_v39  ;;  %vm887_vm3 = vmor %vm885_vm2, %vm886_vm15  ;;  %vm876_vm4 = vweird.f32 %v2992_v23 }
 0x295   : >> { %v881_v9 = vmul.f32 %v2985_v52, %v880_v6  ;;  %vm877_vm7 = vmor %vm875_vm6, %vm876_vm4  ;;  %vm865_vm8 = vweird.f32 %v2980_v44 }
 0x296   : >> { %v902_v21 = vmul.f32 0.5, %v901_v54  ;;  %v871_v36 = vmul.f32 %v2992_v23, %v870_v15  ;;  %v894_v54 = vmul.f32 %v2982_v49, %v893_v41 }
 0x297   : >> { %v882_v31 = vmul.f32 0.5, %v881_v9 }
 0x298   : >> { %v816_v20 = vpop.xlane.xlu0 %815  ;;  %v903_v10 = vsub.f32 1.5, %v902_v21  ;;  %v872_v45 = vmul.f32 0.5, %v871_v36 }
 0x299   : >> { %v2413_v24 = vpop.eup %2412  ;;  %v2997_v7 = vmax.f32 %v816_v20, 1e-24  ;;  %v883_v29 = vsub.f32 1.5, %v882_v31 }
 0x29a   : >> { %v2999_v59 = vpop.eup %2414  ;;  %v910_v1 = vmul.f32 %v2413_v24, %v838_v50  ;;  %v904_v56 = vmul.f32 %v2407_v51, %v903_v10  ;;  %vm916_vm10 = vweird.f32 %v2413_v24  ;;  %v873_v9 = vsub.f32 1.5, %v872_v45 }
 0x29b   : >> { %2416 = vrsqrt.f32 %v2997_v7  ;;  %v860_v28 = vmul.f32 %v2999_v59, %v2980_v44  ;;  %vm917_vm13 = vmor %vm915_vm12, %vm916_vm10  ;;  %v884_v20 = vmul.f32 %v2985_v52, %v883_v29  ;;  %v898_v10 = vsel %vm897_vm1, %v2982_v49, %v894_v54 }
 0x29c   : >> { %v911_v42 = vmul.f32 %v2413_v24, %v910_v1  ;;  %2418 = vrsqrt.f32 %v2995_v27  ;;  %v908_v40 = vsel %vm907_vm11, %v2407_v51, %v904_v56  ;;  %v924_v8 = vmul.f32 %v898_v10, %v2952_v63 }
 0x29d   : >> { %v861_v43 = vmul.f32 %v2999_v59, %v860_v28  ;;  %v925_v21 = vmul.f32 %v908_v40, %v2958_v30  ;;  %v888_v1 = vsel %vm887_vm3, %v2985_v52, %v884_v20  ;;  %v874_v15 = vmul.f32 %v2992_v23, %v873_v9 }
 0x29e   : >> { %v912_v35 = vmul.f32 0.5, %v911_v42  ;;  %v923_v32 = vmul.f32 %v888_v1, %v2948_v14  ;;  %vm866_vm5 = vweird.f32 %v2999_v59  ;;  %vm855_vm10 = vweird.f32 %v2995_v27 }
 0x29f   : >> { %v862_v26 = vmul.f32 0.5, %v861_v43  ;;  %v878_v63 = vsel %vm877_vm7, %v2992_v23, %v874_v15  ;;  %vm867_vm9 = vmor %vm865_vm8, %vm866_vm5  ;;  %vm845_vm12 = vweird.f32 %v2997_v7 }
 0x2a0   : >> { %v913_v37 = vsub.f32 1.5, %v912_v35  ;;  %v929_v28 = vpack.c.bf16 %v924_v8, %v923_v32  ;;  %v922_v56 = vmul.f32 %v878_v63, %v2944_v0 }
 0x2a1   : >> { %v3009_v62 = vpop.eup %2416  ;;  %v863_v30 = vsub.f32 1.5, %v862_v26 }
 0x2a2   : >> { %v914_v34 = vmul.f32 %v2413_v24, %v913_v37  ;;  %v2419_v53 = vpop.eup %2418  ;;  %v840_v33 = vmul.f32 %v3009_v62, %v2997_v7 }
 0x2a3   : >> { %v850_v50 = vmul.f32 %v2419_v53, %v2995_v27  ;;  %v864_v42 = vmul.f32 %v2999_v59, %v863_v30  ;;  %vm856_vm11 = vweird.f32 %v2419_v53 }
 0x2a4   : >> { %v918_v6 = vsel %vm917_vm13, %v2413_v24, %v914_v34  ;;  %v841_v24 = vmul.f32 %v3009_v62, %v840_v33  ;;  %vm846_vm13 = vweird.f32 %v3009_v62  ;;  %vm857_vm14 = vmor %vm855_vm10, %vm856_vm11 }
 0x2a5   : >> { %v926_v19 = vmul.f32 %v918_v6, %v2964_v57  ;;  %v851_v57 = vmul.f32 %v2419_v53, %v850_v50  ;;  %v868_v14 = vsel %vm867_vm9, %v2999_v59, %v864_v42  ;;  %vm847_vm15 = vmor %vm845_vm12, %vm846_vm13 }
 0x2a6   : >> { %v842_v11 = vmul.f32 0.5, %v841_v24  ;;  %v921_v44 = vmul.f32 %v868_v14, %v2940_v25 }
 0x2a7   : >> { %v930_v51 = vpack.c.bf16 %v926_v19, %v925_v21  ;;  %v852_v49 = vmul.f32 0.5, %v851_v57 }
 0x2a8   : >> { %v843_v52 = vsub.f32 1.5, %v842_v11  ;;  %v928_v35 = vpack.c.bf16 %v922_v56, %v921_v44 }
 0x2a9   : >> { %935 = vmatpush.bf16.xpose.msrb.mxu0 %v930_v51  ;;  %2285 = vmatpush.bf16.xpose.msra.mxu1 %v930_v51  ;;  %v853_v31 = vsub.f32 1.5, %v852_v49 }
 0x2aa   : >> { %v844_v39 = vmul.f32 %v3009_v62, %v843_v52 }
 0x2ab   : >> { %v854_v23 = vmul.f32 %v2419_v53, %v853_v31 }
 0x2ac   : >> { %v848_v36 = vsel %vm847_vm15, %v3009_v62, %v844_v39 }
 0x2ad   : >> { %v858_v27 = vsel %vm857_vm14, %v2419_v53, %v854_v23  ;;  %v919_v59 = vmul.f32 %v848_v36, %v2968_v38 }
 0x2ae   : >> { %v920_v0 = vmul.f32 %v858_v27, %v2956_v22 }
 0x2b0   : >> { %v927_v41 = vpack.c.bf16 %v920_v0, %v919_v59 }
 0x2b1   : >> { %936 = vmatpush.bf16.xpose.msrb.mxu0 %v929_v28  ;;  %2286 = vmatpush.bf16.xpose.msra.mxu1 %v929_v28 }
 0x2b9   : >> { %937 = vmatpush.bf16.xpose.msrb.mxu0 %v928_v35  ;;  %2287 = vmatpush.bf16.xpose.msra.mxu1 %v928_v35 }
 0x2c1   : >> { %938 = vmatpush.bf16.xpose.msrb.mxu0 %v927_v41  ;;  %2288 = vmatpush.bf16.xpose.msra.mxu1 %v927_v41 }
 0x2c8   : >> { %939 = vmatmul.bf16.vlgmr.msrb.gmra.mxu0 %v927_v41  ;;  %944 = vmatmul.bf16.vlgmr.msra.gmra.mxu1 %v928_v35 }
 0x2d8   : >> { %949 = vmatmul.bf16.gmra.mxu1 %v929_v28 }
 0x2e8   : >> { %954 = vmatmul.bf16.gmra.mxu1 %v930_v51 }
 0x345   : >> { %v940_v25 = vpop.f32.mrf.mxu0  ;;  %v945_v7 = vpop.f32.mrf.mxu1 }
 0x346   : >> { %v960_v37 = vmul.f32 30.0, %v940_v25  ;;  %v962_v43 = vmul.f32 30.0, %v945_v7 }
 0x348   : >> { %v975_v62 = vsel %vm968_vm0, %v962_v43, -inf  ;;  %v969_v29 = vsel %vm968_vm0, %v960_v37, -inf }
 0x349   : >> { %976 = vmax.xlane.f32.xlu1 %v975_v62  ;;  %970 = vmax.xlane.f32.xlu2 %v969_v29 }
 0x34d   : >> { %v942_v38 = vpop.f32.mrf.mxu0  ;;  %v947_v22 = vpop.f32.mrf.mxu1 }
 0x34e   : >> { %v961_v34 = vmul.f32 30.0, %v942_v38  ;;  %v963_v40 = vmul.f32 30.0, %v947_v22 }
 0x350   : >> { %v978_v53 = vsel %vm968_vm0, %v963_v40, -inf  ;;  %v972_v45 = vsel %vm968_vm0, %v961_v34, -inf }
 0x351   : >> { %979 = vmax.xlane.f32.xlu2 %v978_v53  ;;  %973 = vmax.xlane.f32.xlu0 %v972_v45 }
 0x355   : >> { %v950_v54 = vpop.f32.mrf.mxu1 }
 0x356   : >> { %v964_v33 = vmul.f32 30.0, %v950_v54 }
 0x358   : >> { %v981_v6 = vsel %vm968_vm0, %v964_v33, -inf }
 0x359   : >> { %982 = vmax.xlane.f32.xlu0 %v981_v6 }
 0x35d   : >> { %v952_v26 = vpop.f32.mrf.mxu1 }
 0x35e   : >> { %v965_v21 = vmul.f32 30.0, %v952_v26 }
 0x360   : >> { %v984_v19 = vsel %vm968_vm0, %v965_v21, -inf }
 0x361   : >> { %985 = vmax.xlane.f32.xlu1 %v984_v19 }
 0x365   : >> { %v955_v20 = vpop.f32.mrf.mxu1 }
 0x366   : >> { %v966_v50 = vmul.f32 30.0, %v955_v20 }
 0x368   : >> { %v987_v51 = vsel %vm968_vm0, %v966_v50, -inf }
 0x369   : >> { %988 = vmax.xlane.f32.xlu2 %v987_v51 }
 0x36d   : >> { %v957_v9 = vpop.f32.mrf.mxu1 }
 0x36e   : >> { %v967_v24 = vmul.f32 30.0, %v957_v9 }
 0x370   : >> { %v990_v10 = vsel %vm968_vm0, %v967_v24, -inf }
 0x371   : >> { %991 = vmax.xlane.f32.xlu0 %v990_v10 }
 0x3bc   : >> { %v977_v30 = vpop.xlane.xlu1 %976  ;;  %v971_v57 = vpop.xlane.xlu2 %970 }
 0x3bd   : >> { %v995_v1 = vsub.f32 %v962_v43, %v977_v30  ;;  %v993_v8 = vsub.f32 %v960_v37, %v971_v57 }
 0x3bf   : >> { %v1005_v15 = vmul.f32 1.442695, %v995_v1  ;;  %v1001_v11 = vmul.f32 1.442695, %v993_v8 }
 0x3c1   : >> { %2420 = vpow2.f32 %v1005_v15 }
 0x3c2   : >> { %2422 = vpow2.f32 %v1001_v11 }
 0x3c4   : >> { %v980_v32 = vpop.xlane.xlu2 %979  ;;  %v974_v42 = vpop.xlane.xlu0 %973 }
 0x3c5   : >> { %v996_v49 = vsub.f32 %v963_v40, %v980_v32  ;;  %v994_v28 = vsub.f32 %v961_v34, %v974_v42 }
 0x3c7   : >> { %v2421_v52 = vpop.eup %2420  ;;  %v1007_v63 = vmul.f32 1.442695, %v996_v49  ;;  %v1003_v31 = vmul.f32 1.442695, %v994_v28 }
 0x3c8   : >> { %v2423_v14 = vpop.eup %2422  ;;  %v1023_v56 = vsel %vm968_vm0, %v2421_v52, 0.0 }
 0x3c9   : >> { %2424 = vpow2.f32 %v1007_v63  ;;  %v1017_v39 = vsel %vm968_vm0, %v2423_v14, 0.0  ;;  %1024 = vadd.xlane.f32.xlu0 %v1023_v56 }
 0x3ca   : >> { %2426 = vpow2.f32 %v1003_v31  ;;  %1018 = vadd.xlane.f32.xlu1 %v1017_v39 }
 0x3cc   : >> { %v983_v44 = vpop.xlane.xlu0 %982 }
 0x3cd   : >> { %v997_v23 = vsub.f32 %v964_v33, %v983_v44 }
 0x3cf   : >> { %v2425_v35 = vpop.eup %2424  ;;  %v1009_v36 = vmul.f32 1.442695, %v997_v23 }
 0x3d0   : >> { %v2427_v27 = vpop.eup %2426  ;;  %v1026_v59 = vsel %vm968_vm0, %v2425_v35, 0.0 }
 0x3d1   : >> { %2428 = vpow2.f32 %v1009_v36  ;;  %v1020_v0 = vsel %vm968_vm0, %v2427_v27, 0.0 }
 0x3d2   : >> { %1027 = vadd.xlane.f32.xlu1 %v1026_v59  ;;  %1021 = vadd.xlane.f32.xlu2 %v1020_v0 }
 0x3d4   : >> { %v986_v41 = vpop.xlane.xlu1 %985 }
 0x3d5   : >> { %v998_v25 = vsub.f32 %v965_v21, %v986_v41 }
 0x3d7   : >> { %v2429_v7 = vpop.eup %2428  ;;  %v1011_v37 = vmul.f32 1.442695, %v998_v25 }
 0x3d8   : >> { %v1029_v43 = vsel %vm968_vm0, %v2429_v7, 0.0 }
 0x3d9   : >> { %2430 = vpow2.f32 %v1011_v37 }
 0x3da   : >> { %1030 = vadd.xlane.f32.xlu2 %v1029_v43 }
 0x3dc   : >> { %v989_v62 = vpop.xlane.xlu2 %988 }
 0x3dd   : >> { %v999_v29 = vsub.f32 %v966_v50, %v989_v62 }
 0x3df   : >> { %v2431_v38 = vpop.eup %2430  ;;  %v1013_v22 = vmul.f32 1.442695, %v999_v29 }
 0x3e0   : >> { %v1032_v34 = vsel %vm968_vm0, %v2431_v38, 0.0 }
 0x3e1   : >> { %2432 = vpow2.f32 %v1013_v22  ;;  %1033 = vadd.xlane.f32.xlu0 %v1032_v34 }
 0x3e4   : >> { %v992_v40 = vpop.xlane.xlu0 %991 }
 0x3e5   : >> { %v1000_v53 = vsub.f32 %v967_v24, %v992_v40 }
 0x3e7   : >> { %v2433_v45 = vpop.eup %2432  ;;  %v1015_v54 = vmul.f32 1.442695, %v1000_v53 }
 0x3e8   : >> { %v1035_v33 = vsel %vm968_vm0, %v2433_v45, 0.0 }
 0x3e9   : >> { %2434 = vpow2.f32 %v1015_v54  ;;  %1036 = vadd.xlane.f32.xlu1 %v1035_v33 }
 0x3ef   : >> { %v2435_v6 = vpop.eup %2434 }
 0x3f0   : >> { %v1038_v26 = vsel %vm968_vm0, %v2435_v6, 0.0 }
 0x3f1   : >> { %1039 = vadd.xlane.f32.xlu2 %v1038_v26 }
 0x43c   : >> { %v1025_v30 = vpop.xlane.xlu0 %1024 }
 0x43d   : >> { %v1019_v21 = vpop.xlane.xlu1 %1018 }
 0x43e   : >> { %2436 = vrcp.f32 %v1019_v21 }
 0x444   : >> { %v2437_v20 = vpop.eup %2436 }
 0x445   : >> { %v1022_v19 = vpop.xlane.xlu2 %1021  ;;  %v1049_v51 = vmul.f32 %v2437_v20, %v2423_v14  ;;  %v1028_v10 = vpop.xlane.xlu1 %1027 }
 0x446   : >> { %2438 = vrcp.f32 %v1022_v19 }
 0x447   : >> { %2440 = vrcp.f32 %v1028_v10 }
 0x448   : >> { %2442 = vrcp.f32 %v1025_v30 }
 0x44c   : >> { %v2439_v50 = vpop.eup %2438 }
 0x44d   : >> { %v1050_v9 = vmul.f32 %v2439_v50, %v2427_v27  ;;  %v2441_v57 = vpop.eup %2440  ;;  %v1031_v42 = vpop.xlane.xlu2 %1030 }
 0x44e   : >> { %v2443_v1 = vpop.eup %2442  ;;  %v1052_v8 = vmul.f32 %v2441_v57, %v2425_v35 }
 0x44f   : >> { %v1057_v24 = vpack.c.bf16 %v1050_v9, %v1049_v51  ;;  %v1051_v15 = vmul.f32 %v2443_v1, %v2421_v52 }
 0x451   : >> { %2049 = vmatmul.msk.bf16.vlgmr.msra.gmra.mxu2 %vm968_vm0, %v1057_v24  ;;  %v1058_v32 = vpack.c.bf16 %v1052_v8, %v1051_v15  ;;  %v2171_v8 = vld [vmem:[%s3379_s6 + $0x38] sm:$0xff]  ;;  %v2169_v15 = vld [vmem:[%s3379_s6 + $0x28] sm:$0xff] }
 0x452   : >> { %1229 = vmatpush.bf16.msrb.mxu3 %v2171_v8  ;;  %v2173_v8 = vld [vmem:[#allocation2] sm:$0xff] }
 0x454   : >> { %v1034_v11 = vpop.xlane.xlu0 %1033 }
 0x455   : >> { %2444 = vrcp.f32 %v1034_v11  ;;  %v2168_v11 = vld [vmem:[%s3379_s6 + $0x20] sm:$0xff] }
 0x456   : >> { %2446 = vrcp.f32 %v1031_v42  ;;  %v2167_v42 = vld [vmem:[%s3379_s6 + $0x18] sm:$0xff] }
 0x45b   : >> { %v2445_v49 = vpop.eup %2444 }
 0x45c   : >> { %v2447_v28 = vpop.eup %2446  ;;  %v1054_v63 = vmul.f32 %v2445_v49, %v2431_v38  ;;  %v1037_v39 = vpop.xlane.xlu1 %1036  ;;  %v2166_v49 = vld [vmem:[%s3379_s6 + $0x10] sm:$0xff] }
 0x45d   : >> { %v1053_v31 = vmul.f32 %v2447_v28, %v2429_v7 }
 0x45f   : >> { %v1059_v56 = vpack.c.bf16 %v1054_v63, %v1053_v31  ;;  %v2165_v31 = vld [vmem:[%s3379_s6 + $0x8] sm:$0xff] }
 0x461   : >> { %2050 = vmatmul.msk.bf16.gmra.mxu2 %vm968_vm0, %v1058_v32 }
 0x464   : >> { %v1040_v14 = vpop.xlane.xlu2 %1039 }
 0x465   : >> { %2448 = vrcp.f32 %v1040_v14 }
 0x466   : >> { %2450 = vrcp.f32 %v1037_v39 }
 0x46b   : >> { %v2449_v44 = vpop.eup %2448 }
 0x46c   : >> { %v2451_v52 = vpop.eup %2450  ;;  %v1056_v23 = vmul.f32 %v2449_v44, %v2435_v6 }
 0x46d   : >> { %v1055_v35 = vmul.f32 %v2451_v52, %v2433_v45 }
 0x46f   : >> { %v1060_v36 = vpack.c.bf16 %v1056_v23, %v1055_v35  ;;  %v2164_v23 = vld [vmem:[%s3379_s6] sm:$0xff] }
 0x471   : >> { %2051 = vmatmul.msk.bf16.gmra.mxu2 %vm968_vm0, %v1059_v56 }
 0x481   : >> { %2052 = vmatmul.msk.bf16.gmra.mxu2 %vm968_vm0, %v1060_v36 }
 0x4d4   : >> { %v1082_v27 = vpop.f32.mrf.mxu2 }
 0x4d5   : >> { %v3069_v43 = vadd.f32 %v1082_v27, %v2922_v2 }
 0x4d7   : >> { %v1110_v22 = vmul.f32 %v3069_v43, %v3069_v43 }
 0x4dc   : >> { %v1084_v59 = vpop.f32.mrf.mxu2 }
 0x4dd   : >> { %v3066_v37 = vadd.f32 %v1084_v59, %v2924_v48 }
 0x4df   : >> { %v1111_v29 = vmul.f32 %v3066_v37, %v3066_v37 }
 0x4e1   : >> { %v1118_v40 = vadd.f32 %v1111_v29, %v1110_v22  ;;  %v2403_v22 = vld [vmem:[%s3380_s7] ss:$0 sm:$0xff] }
 0x4e4   : >> { %v1087_v0 = vpop.f32.mrf.mxu2 }
 0x4e5   : >> { %v3072_v62 = vadd.f32 %v1087_v0, %v2914_v60 }
 0x4e7   : >> { %v1112_v34 = vmul.f32 %v3072_v62, %v3072_v62 }
 0x4e9   : >> { %v1119_v45 = vadd.f32 %v1118_v40, %v1112_v34 }
 0x4ec   : >> { %v1089_v41 = vpop.f32.mrf.mxu2 }
 0x4ed   : >> { %v3077_v38 = vadd.f32 %v1089_v41, %v2916_v46 }
 0x4ef   : >> { %v1113_v60 = vmul.f32 %v3077_v38, %v3077_v38 }
 0x4f1   : >> { %v1120_v33 = vadd.f32 %v1119_v45, %v1113_v60 }
 0x4f4   : >> { %v1092_v25 = vpop.f32.mrf.mxu2 }
 0x4f5   : >> { %v3084_v48 = vadd.f32 %v1092_v25, %v2918_v47 }
 0x4f7   : >> { %v1114_v46 = vmul.f32 %v3084_v48, %v3084_v48 }
 0x4f9   : >> { %v1121_v6 = vadd.f32 %v1120_v33, %v1114_v46 }
 0x4fc   : >> { %v1094_v7 = vpop.f32.mrf.mxu2 }
 0x4fd   : >> { %v3089_v53 = vadd.f32 %v1094_v7, %v2920_v61 }
 0x4ff   : >> { %v1115_v47 = vmul.f32 %v3089_v53, %v3089_v53 }
 0x501   : >> { %v1122_v19 = vadd.f32 %v1121_v6, %v1115_v47 }
 0x504   : >> { %v1097_v2 = vpop.f32.mrf.mxu2 }
 0x505   : >> { %v3094_v54 = vadd.f32 %v1097_v2, %v2910_v55 }
 0x507   : >> { %v1116_v26 = vmul.f32 %v3094_v54, %v3094_v54 }
 0x509   : >> { %v1123_v50 = vadd.f32 %v1122_v19, %v1116_v26  ;;  %v2175_v26 = vld [vmem:[#allocation2 + $0x8] sm:$0xff] }
 0x50a   : >> { %1418 = vmatpush.bf16.xpose.msrb.mxu2 %v2175_v26 }
 0x50c   : >> { %v1099_v21 = vpop.f32.mrf.mxu2 }
 0x50d   : >> { %v1109_v61 = vadd.f32 %v1099_v21, %v2912_v58  ;;  %v2170_v58 = vld [vmem:[%s3379_s6 + $0x30] sm:$0xff] }
 0x50e   : >> { %1230 = vmatpush.bf16.msrb.mxu3 %v2170_v58  ;;  %v2172_v58 = vld [vmem:[#allocation2 + $0x10] sm:$0xff] }
 0x50f   : >> { %v1117_v20 = vmul.f32 %v1109_v61, %v1109_v61 }
 0x511   : >> { %v1124_v51 = vadd.f32 %v1123_v50, %v1117_v20  ;;  %v2174_v20 = vld [vmem:[#allocation2 + $0x18] sm:$0xff] }
 0x512   : >> { %1231 = vmatpush.bf16.msrb.mxu3 %v2169_v15  ;;  %1419 = vmatpush.bf16.xpose.msrb.mxu2 %v2174_v20 }
 0x513   : >> { %1125 = vadd.xlane.f32.xlu0 %v1124_v51 }
 0x516   : >> { %1232 = vmatpush.bf16.msrb.mxu3 %v2168_v11 }
 0x51a   : >> { %1233 = vmatpush.bf16.msrb.mxu3 %v2167_v42  ;;  %1420 = vmatpush.bf16.xpose.msrb.mxu2 %v2173_v8 }
 0x51e   : >> { %1234 = vmatpush.bf16.msrb.mxu3 %v2166_v49 }
 0x522   : >> { %1235 = vmatpush.bf16.msrb.mxu3 %v2165_v31  ;;  %1421 = vmatpush.bf16.xpose.msrb.mxu2 %v2172_v58 }
 0x526   : >> { %1236 = vmatpush.bf16.msrb.mxu3 %v2164_v23 }
 0x586   : >> { %v1126_v9 = vpop.xlane.xlu0 %1125 }
 0x587   : >> { %v1127_v10 = vrot.slane %v1126_v9, 4 }
 0x589   : >> { %v1128_v55 = vadd.f32 %v1127_v10, %v1126_v9 }
 0x58b   : >> { %v1129_v24 = vrot.slane %v1128_v55, 2 }
 0x58d   : >> { %v1130_v30 = vadd.f32 %v1129_v24, %v1128_v55 }
 0x58f   : >> { %v1131_v57 = vrot.slane %v1130_v30, 1 }
 0x591   : >> { %v1132_v1 = vadd.f32 %v1131_v57, %v1130_v30 }
 0x593   : >> { %2289 = vpush %v1132_v1 }
 0x5c4   : >> { %s2290_s26 = spop %2289 }
 0x5c5   : >> { %s1134_s9 = sadd.f32 1e-05, %s2290_s26 }
 0x5c7   : >> { %v1135_v32 = vstv %s1134_s9 }
 0x5c8   : >> { %2452 = vrsqrt.f32 %v1135_v32  ;;  %vm1142_vm2 = vweird.f32 %v1135_v32 }
 0x5ce   : >> { %v2453_v28 = vpop.eup %2452 }
 0x5cf   : >> { %v1137_v63 = vmul.f32 %v2453_v28, %v1135_v32  ;;  %vm1143_vm1 = vweird.f32 %v2453_v28 }
 0x5d0   : >> { %vm1144_vm3 = vmor %vm1142_vm2, %vm1143_vm1 }
 0x5d1   : >> { %v1138_v14 = vmul.f32 %v2453_v28, %v1137_v63 }
 0x5d3   : >> { %v1139_v56 = vmul.f32 0.5, %v1138_v14 }
 0x5d5   : >> { %v1140_v39 = vsub.f32 1.5, %v1139_v56 }
 0x5d7   : >> { %v1141_v44 = vmul.f32 %v2453_v28, %v1140_v39 }
 0x5d9   : >> { %v1145_v52 = vsel %vm1144_vm3, %v2453_v28, %v1141_v44 }
 0x5da   : >> { %2291 = vpush %v1145_v52 }
 0x60b   : >> { %s2292_s18 = spop %2291 }
 0x60c   : >> { %s1147_s19 = smul.f32 2.0, %s2292_s18 }
 0x60e   : >> { %v1148_v35 = vstv %s1147_s19 }
 0x60f   : >> { %v3126_v36 = vmul.f32 %v1148_v35, %v3069_v43  ;;  %v3129_v27 = vmul.f32 %v1148_v35, %v3066_v37  ;;  %v3134_v0 = vmul.f32 %v1148_v35, %v3072_v62  ;;  %v3137_v41 = vmul.f32 %v1148_v35, %v3077_v38 }
 0x610   : >> { %v3142_v7 = vmul.f32 %v1148_v35, %v3084_v48  ;;  %v3145_v37 = vmul.f32 %v1148_v35, %v3089_v53  ;;  %v3150_v62 = vmul.f32 %v1148_v35, %v3094_v54  ;;  %v3152_v29 = vmul.f32 %v1148_v35, %v1109_v61 }
 0x611   : >> { %v1157_v59 = vpack.c.bf16 %v3129_v27, %v3126_v36  ;;  %v1158_v25 = vpack.c.bf16 %v3137_v41, %v3134_v0 }
 0x612   : >> { %v1159_v43 = vpack.c.bf16 %v3145_v37, %v3142_v7  ;;  %v1160_v38 = vpack.c.bf16 %v3152_v29, %v3150_v62 }
 0x613   : >> { %1237 = vmatmul.bf16.vlgmr.msrb.gmra.mxu3 %v1157_v59 }
 0x623   : >> { %1242 = vmatmul.bf16.gmra.mxu3 %v1158_v25 }
 0x633   : >> { %1247 = vmatmul.bf16.gmra.mxu3 %v1159_v43 }
 0x643   : >> { %1252 = vmatmul.bf16.gmra.mxu3 %v1160_v38 }
 0x696   : >> { %v1238_v34 = vpop.f32.mrf.mxu3 }
 0x697   : >> { %v3159_v48 = vadd.f32 %v2403_v22, %v1238_v34 }
 0x699   : >> { %v1258_v2 = vmul.f32 %v3159_v48, %v3159_v48 }
 0x69b   : >> { %1266 = vadd.xlane.f32.xlu1 %v1258_v2 }
 0x69e   : >> { %v1240_v40 = vpop.f32.mrf.mxu3 }
 0x69f   : >> { %v3163_v60 = vadd.f32 %v2403_v22, %v1240_v40 }
 0x6a1   : >> { %v1259_v53 = vmul.f32 %v3163_v60, %v3163_v60 }
 0x6a3   : >> { %1268 = vadd.xlane.f32.xlu2 %v1259_v53 }
 0x6a6   : >> { %v1243_v45 = vpop.f32.mrf.mxu3 }
 0x6a7   : >> { %v3167_v46 = vadd.f32 %v2403_v22, %v1243_v45 }
 0x6a9   : >> { %v1260_v54 = vmul.f32 %v3167_v46, %v3167_v46 }
 0x6ab   : >> { %1270 = vadd.xlane.f32.xlu0 %v1260_v54 }
 0x6ae   : >> { %v1245_v33 = vpop.f32.mrf.mxu3 }
 0x6af   : >> { %v3171_v47 = vadd.f32 %v2403_v22, %v1245_v33 }
 0x6b1   : >> { %v1261_v6 = vmul.f32 %v3171_v47, %v3171_v47 }
 0x6b3   : >> { %1272 = vadd.xlane.f32.xlu1 %v1261_v6 }
 0x6b6   : >> { %v1248_v21 = vpop.f32.mrf.mxu3 }
 0x6b7   : >> { %v3175_v19 = vadd.f32 %v2403_v22, %v1248_v21 }
 0x6b9   : >> { %v1262_v61 = vmul.f32 %v3175_v19, %v3175_v19 }
 0x6bb   : >> { %1274 = vadd.xlane.f32.xlu2 %v1262_v61 }
 0x6be   : >> { %v1250_v50 = vpop.f32.mrf.mxu3 }
 0x6bf   : >> { %v3179_v51 = vadd.f32 %v2403_v22, %v1250_v50 }
 0x6c1   : >> { %v1263_v9 = vmul.f32 %v3179_v51, %v3179_v51 }
 0x6c3   : >> { %1276 = vadd.xlane.f32.xlu0 %v1263_v9 }
 0x6c6   : >> { %v1253_v10 = vpop.f32.mrf.mxu3 }
 0x6c7   : >> { %v3183_v55 = vadd.f32 %v2403_v22, %v1253_v10 }
 0x6c9   : >> { %v1264_v24 = vmul.f32 %v3183_v55, %v3183_v55 }
 0x6cb   : >> { %1278 = vadd.xlane.f32.xlu1 %v1264_v24 }
 0x6ce   : >> { %v1255_v30 = vpop.f32.mrf.mxu3 }
 0x6cf   : >> { %v3187_v57 = vadd.f32 %v2403_v22, %v1255_v30 }
 0x6d1   : >> { %v1265_v1 = vmul.f32 %v3187_v57, %v3187_v57 }
 0x6d3   : >> { %1280 = vadd.xlane.f32.xlu2 %v1265_v1 }
 0x70e   : >> { %v1267_v15 = vpop.xlane.xlu1 %1266 }
 0x70f   : >> { %v1282_v11 = vmax.f32 %v1267_v15, 1e-24 }
 0x711   : >> { %2454 = vrsqrt.f32 %v1282_v11  ;;  %vm1296_vm5 = vweird.f32 %v1282_v11 }
 0x716   : >> { %v1269_v32 = vpop.xlane.xlu2 %1268 }
 0x717   : >> { %v2455_v42 = vpop.eup %2454  ;;  %v1283_v49 = vmax.f32 %v1269_v32, 1e-24 }
 0x718   : >> { %v1291_v28 = vmul.f32 %v2455_v42, %v1282_v11  ;;  %vm1297_vm4 = vweird.f32 %v2455_v42 }
 0x719   : >> { %2456 = vrsqrt.f32 %v1283_v49  ;;  %vm1298_vm7 = vmor %vm1296_vm5, %vm1297_vm4  ;;  %vm1306_vm8 = vweird.f32 %v1283_v49 }
 0x71a   : >> { %v1292_v63 = vmul.f32 %v2455_v42, %v1291_v28 }
 0x71c   : >> { %v1293_v31 = vmul.f32 0.5, %v1292_v63 }
 0x71e   : >> { %v1271_v14 = vpop.xlane.xlu0 %1270  ;;  %v1294_v44 = vsub.f32 1.5, %v1293_v31 }
 0x71f   : >> { %v2457_v56 = vpop.eup %2456  ;;  %v1284_v39 = vmax.f32 %v1271_v14, 1e-24 }
 0x720   : >> { %v1301_v52 = vmul.f32 %v2457_v56, %v1283_v49  ;;  %v1295_v35 = vmul.f32 %v2455_v42, %v1294_v44  ;;  %vm1307_vm6 = vweird.f32 %v2457_v56 }
 0x721   : >> { %2458 = vrsqrt.f32 %v1284_v39  ;;  %vm1308_vm9 = vmor %vm1306_vm8, %vm1307_vm6  ;;  %vm1316_vm11 = vweird.f32 %v1284_v39 }
 0x722   : >> { %v1302_v23 = vmul.f32 %v2457_v56, %v1301_v52  ;;  %v1299_v40 = vsel %vm1298_vm7, %v2455_v42, %v1295_v35 }
 0x723   : >> { %v1370_v54 = vmul.f32 %v1299_v40, %v3159_v48 }
 0x724   : >> { %v1303_v59 = vmul.f32 0.5, %v1302_v23 }
 0x726   : >> { %v1304_v25 = vsub.f32 1.5, %v1303_v59  ;;  %v1273_v43 = vpop.xlane.xlu1 %1272 }
 0x727   : >> { %v2459_v38 = vpop.eup %2458  ;;  %v1285_v22 = vmax.f32 %v1273_v43, 1e-24 }
 0x728   : >> { %v1305_v34 = vmul.f32 %v2457_v56, %v1304_v25  ;;  %v1311_v2 = vmul.f32 %v2459_v38, %v1284_v39  ;;  %vm1317_vm10 = vweird.f32 %v2459_v38 }
 0x729   : >> { %2460 = vrsqrt.f32 %v1285_v22  ;;  %vm1318_vm13 = vmor %vm1316_vm11, %vm1317_vm10  ;;  %vm1326_vm14 = vweird.f32 %v1285_v22 }
 0x72a   : >> { %v1312_v53 = vmul.f32 %v2459_v38, %v1311_v2  ;;  %v1309_v45 = vsel %vm1308_vm9, %v2457_v56, %v1305_v34 }
 0x72b   : >> { %v1371_v33 = vmul.f32 %v1309_v45, %v3163_v60 }
 0x72c   : >> { %v1313_v6 = vmul.f32 0.5, %v1312_v53 }
 0x72d   : >> { %v1378_v26 = vpack.c.bf16 %v1371_v33, %v1370_v54 }
 0x72e   : >> { %v1275_v21 = vpop.xlane.xlu2 %1274  ;;  %v1314_v50 = vsub.f32 1.5, %v1313_v6 }
 0x72f   : >> { %v2461_v61 = vpop.eup %2460  ;;  %v1286_v20 = vmax.f32 %v1275_v21, 1e-24  ;;  %1422 = vmatmul.bf16.vlgmr.msrb.gmra.mxu2 %v1378_v26 }
 0x730   : >> { %v1321_v9 = vmul.f32 %v2461_v61, %v1285_v22  ;;  %v1315_v30 = vmul.f32 %v2459_v38, %v1314_v50  ;;  %vm1327_vm12 = vweird.f32 %v2461_v61 }
 0x731   : >> { %2462 = vrsqrt.f32 %v1286_v20  ;;  %vm1328_vm15 = vmor %vm1326_vm14, %vm1327_vm12  ;;  %vm1336_vm2 = vweird.f32 %v1286_v20 }
 0x732   : >> { %v1322_v10 = vmul.f32 %v2461_v61, %v1321_v9  ;;  %v1319_v15 = vsel %vm1318_vm13, %v2459_v38, %v1315_v30 }
 0x733   : >> { %v1372_v49 = vmul.f32 %v1319_v15, %v3167_v46 }
 0x734   : >> { %v1323_v24 = vmul.f32 0.5, %v1322_v10 }
 0x736   : >> { %v1324_v1 = vsub.f32 1.5, %v1323_v24  ;;  %v1277_v8 = vpop.xlane.xlu0 %1276 }
 0x737   : >> { %v2463_v48 = vpop.eup %2462  ;;  %v1287_v60 = vmax.f32 %v1277_v8, 1e-24 }
 0x738   : >> { %v1331_v58 = vmul.f32 %v2463_v48, %v1286_v20  ;;  %v1325_v11 = vmul.f32 %v2461_v61, %v1324_v1  ;;  %vm1337_vm1 = vweird.f32 %v2463_v48 }
 0x739   : >> { %2464 = vrsqrt.f32 %v1287_v60  ;;  %vm1338_vm4 = vmor %vm1336_vm2, %vm1337_vm1  ;;  %vm1346_vm5 = vweird.f32 %v1287_v60 }
 0x73a   : >> { %v1332_v32 = vmul.f32 %v2463_v48, %v1331_v58  ;;  %v1329_v42 = vsel %vm1328_vm15, %v2461_v61, %v1325_v11 }
 0x73b   : >> { %v1373_v28 = vmul.f32 %v1329_v42, %v3171_v47 }
 0x73c   : >> { %v1333_v63 = vmul.f32 0.5, %v1332_v32 }
 0x73d   : >> { %v1379_v31 = vpack.c.bf16 %v1373_v28, %v1372_v49 }
 0x73e   : >> { %v1279_v14 = vpop.xlane.xlu1 %1278  ;;  %v1334_v44 = vsub.f32 1.5, %v1333_v63 }
 0x73f   : >> { %v2465_v56 = vpop.eup %2464  ;;  %v1288_v39 = vmax.f32 %v1279_v14, 1e-24  ;;  %1427 = vmatmul.bf16.gmra.mxu2 %v1379_v31 }
 0x740   : >> { %v1341_v52 = vmul.f32 %v2465_v56, %v1287_v60  ;;  %v1335_v59 = vmul.f32 %v2463_v48, %v1334_v44  ;;  %vm1347_vm3 = vweird.f32 %v2465_v56 }
 0x741   : >> { %2466 = vrsqrt.f32 %v1288_v39  ;;  %vm1348_vm6 = vmor %vm1346_vm5, %vm1347_vm3  ;;  %vm1356_vm8 = vweird.f32 %v1288_v39 }
 0x742   : >> { %v1342_v23 = vmul.f32 %v2465_v56, %v1341_v52  ;;  %v1339_v22 = vsel %vm1338_vm4, %v2463_v48, %v1335_v59 }
 0x743   : >> { %v1374_v53 = vmul.f32 %v1339_v22, %v3175_v19 }
 0x744   : >> { %v1343_v35 = vmul.f32 0.5, %v1342_v23 }
 0x746   : >> { %v1344_v25 = vsub.f32 1.5, %v1343_v35  ;;  %v1281_v43 = vpop.xlane.xlu2 %1280 }
 0x747   : >> { %v2467_v46 = vpop.eup %2466  ;;  %v1289_v47 = vmax.f32 %v1281_v43, 1e-24 }
 0x748   : >> { %v1351_v38 = vmul.f32 %v2467_v46, %v1288_v39  ;;  %v1345_v34 = vmul.f32 %v2465_v56, %v1344_v25  ;;  %vm1357_vm7 = vweird.f32 %v2467_v46 }
 0x749   : >> { %2468 = vrsqrt.f32 %v1289_v47  ;;  %vm1358_vm10 = vmor %vm1356_vm8, %vm1357_vm7  ;;  %vm1366_vm11 = vweird.f32 %v1289_v47 }
 0x74a   : >> { %v1352_v2 = vmul.f32 %v2467_v46, %v1351_v38  ;;  %v1349_v40 = vsel %vm1348_vm6, %v2465_v56, %v1345_v34 }
 0x74b   : >> { %v1375_v45 = vmul.f32 %v1349_v40, %v3179_v51 }
 0x74c   : >> { %v1353_v54 = vmul.f32 0.5, %v1352_v2 }
 0x74d   : >> { %v1380_v33 = vpack.c.bf16 %v1375_v45, %v1374_v53 }
 0x74e   : >> { %v1354_v26 = vsub.f32 1.5, %v1353_v54 }
 0x74f   : >> { %v2469_v6 = vpop.eup %2468  ;;  %1432 = vmatmul.bf16.gmra.mxu2 %v1380_v33 }
 0x750   : >> { %v1361_v21 = vmul.f32 %v2469_v6, %v1289_v47  ;;  %v1355_v50 = vmul.f32 %v2467_v46, %v1354_v26  ;;  %vm1367_vm9 = vweird.f32 %v2469_v6 }
 0x751   : >> { %vm1368_vm12 = vmor %vm1366_vm11, %vm1367_vm9 }
 0x752   : >> { %v1362_v61 = vmul.f32 %v2469_v6, %v1361_v21  ;;  %v1359_v10 = vsel %vm1358_vm10, %v2467_v46, %v1355_v50 }
 0x753   : >> { %v1376_v51 = vmul.f32 %v1359_v10, %v3183_v55 }
 0x754   : >> { %v1363_v20 = vmul.f32 0.5, %v1362_v61 }
 0x756   : >> { %v1364_v9 = vsub.f32 1.5, %v1363_v20 }
 0x758   : >> { %v1365_v24 = vmul.f32 %v2469_v6, %v1364_v9 }
 0x75a   : >> { %v1369_v19 = vsel %vm1368_vm12, %v2469_v6, %v1365_v24 }
 0x75b   : >> { %v1377_v30 = vmul.f32 %v1369_v19, %v3187_v57 }
 0x75d   : >> { %v1381_v1 = vpack.c.bf16 %v1377_v30, %v1376_v51 }
 0x75f   : >> { %1437 = vmatmul.bf16.gmra.mxu2 %v1381_v1 }
 0x7b2   : >> { %v1423_v8 = vpop.f32.mrf.mxu2 }
 0x7b3   : >> { %v1443_v48 = vmul.f32 30.0, %v1423_v8 }
 0x7b5   : >> { %v1451_v60 = vsel %vm968_vm0, %v1443_v48, -inf }
 0x7b6   : >> { %1452 = vmax.xlane.f32.xlu0 %v1451_v60 }
 0x7ba   : >> { %v1425_v58 = vpop.f32.mrf.mxu2 }
 0x7bb   : >> { %v1444_v15 = vmul.f32 30.0, %v1425_v58 }
 0x7bd   : >> { %v1454_v11 = vsel %vm968_vm0, %v1444_v15, -inf }
 0x7be   : >> { %1455 = vmax.xlane.f32.xlu1 %v1454_v11 }
 0x7c2   : >> { %v1428_v32 = vpop.f32.mrf.mxu2 }
 0x7c3   : >> { %v1445_v42 = vmul.f32 30.0, %v1428_v32 }
 0x7c5   : >> { %v1457_v49 = vsel %vm968_vm0, %v1445_v42, -inf }
 0x7c6   : >> { %1458 = vmax.xlane.f32.xlu2 %v1457_v49 }
 0x7ca   : >> { %v1430_v55 = vpop.f32.mrf.mxu2 }
 0x7cb   : >> { %v1446_v28 = vmul.f32 30.0, %v1430_v55 }
 0x7cd   : >> { %v1460_v57 = vsel %vm968_vm0, %v1446_v28, -inf }
 0x7ce   : >> { %1461 = vmax.xlane.f32.xlu0 %v1460_v57 }
 0x7d2   : >> { %v1433_v63 = vpop.f32.mrf.mxu2 }
 0x7d3   : >> { %v1447_v31 = vmul.f32 30.0, %v1433_v63 }
 0x7d5   : >> { %v1463_v14 = vsel %vm968_vm0, %v1447_v31, -inf }
 0x7d6   : >> { %1464 = vmax.xlane.f32.xlu1 %v1463_v14 }
 0x7da   : >> { %v1435_v56 = vpop.f32.mrf.mxu2 }
 0x7db   : >> { %v1448_v39 = vmul.f32 30.0, %v1435_v56 }
 0x7dd   : >> { %v1466_v44 = vsel %vm968_vm0, %v1448_v39, -inf }
 0x7de   : >> { %1467 = vmax.xlane.f32.xlu2 %v1466_v44  ;;  %v2183_v44 = vld [vmem:[#allocation3 + $0x10] sm:$0xff] }
 0x7df   : >> { %1707 = vmatpush.bf16.msrb.mxu1 %v2183_v44 }
 0x7e2   : >> { %v1438_v52 = vpop.f32.mrf.mxu2 }
 0x7e3   : >> { %v1449_v23 = vmul.f32 30.0, %v1438_v52  ;;  %v2178_v52 = vld [vmem:[#allocation4 + $0x10] sm:$0xff] }
 0x7e5   : >> { %v1469_v35 = vsel %vm968_vm0, %v1449_v23, -inf }
 0x7e6   : >> { %1470 = vmax.xlane.f32.xlu0 %v1469_v35  ;;  %v2177_v35 = vld [vmem:[#allocation4 + $0x8] sm:$0xff] }
 0x7ea   : >> { %v1440_v59 = vpop.f32.mrf.mxu2 }
 0x7eb   : >> { %v1450_v25 = vmul.f32 30.0, %v1440_v59  ;;  %v2181_v59 = vld [vmem:[#allocation3 + $0x18] sm:$0xff] }
 0x7ed   : >> { %v1472_v43 = vsel %vm968_vm0, %v1450_v25, -inf }
 0x7ee   : >> { %1473 = vmax.xlane.f32.xlu1 %v1472_v43  ;;  %v2180_v43 = vld [vmem:[#allocation3] sm:$0xff] }
 0x829   : >> { %v1453_v46 = vpop.xlane.xlu0 %1452 }
 0x82a   : >> { %v1475_v47 = vsub.f32 %v1443_v48, %v1453_v46 }
 0x82c   : >> { %v1483_v38 = vmul.f32 1.442695, %v1475_v47 }
 0x82e   : >> { %2470 = vpow2.f32 %v1483_v38 }
 0x831   : >> { %v1456_v22 = vpop.xlane.xlu1 %1455 }
 0x832   : >> { %v1476_v34 = vsub.f32 %v1444_v15, %v1456_v22 }
 0x834   : >> { %v3207_v2 = vpop.eup %2470  ;;  %v1485_v40 = vmul.f32 1.442695, %v1476_v34 }
 0x835   : >> { %v1499_v53 = vsel %vm968_vm0, %v3207_v2, 0.0 }
 0x836   : >> { %2472 = vpow2.f32 %v1485_v40  ;;  %1500 = vadd.xlane.f32.xlu2 %v1499_v53 }
 0x839   : >> { %v1459_v45 = vpop.xlane.xlu2 %1458 }
 0x83a   : >> { %v1477_v54 = vsub.f32 %v1445_v42, %v1459_v45 }
 0x83c   : >> { %v3211_v33 = vpop.eup %2472  ;;  %v1487_v6 = vmul.f32 1.442695, %v1477_v54 }
 0x83d   : >> { %v1502_v26 = vsel %vm968_vm0, %v3211_v33, 0.0 }
 0x83e   : >> { %2474 = vpow2.f32 %v1487_v6  ;;  %1503 = vadd.xlane.f32.xlu0 %v1502_v26 }
 0x841   : >> { %v1462_v21 = vpop.xlane.xlu0 %1461 }
 0x842   : >> { %v1478_v61 = vsub.f32 %v1446_v28, %v1462_v21 }
 0x844   : >> { %v3215_v20 = vpop.eup %2474  ;;  %v1489_v50 = vmul.f32 1.442695, %v1478_v61 }
 0x845   : >> { %v1505_v9 = vsel %vm968_vm0, %v3215_v20, 0.0 }
 0x846   : >> { %2476 = vpow2.f32 %v1489_v50  ;;  %1506 = vadd.xlane.f32.xlu1 %v1505_v9 }
 0x849   : >> { %v1465_v10 = vpop.xlane.xlu1 %1464 }
 0x84a   : >> { %v1479_v24 = vsub.f32 %v1447_v31, %v1465_v10 }
 0x84c   : >> { %v3219_v19 = vpop.eup %2476  ;;  %v1491_v51 = vmul.f32 1.442695, %v1479_v24 }
 0x84d   : >> { %v1508_v30 = vsel %vm968_vm0, %v3219_v19, 0.0 }
 0x84e   : >> { %2478 = vpow2.f32 %v1491_v51  ;;  %1509 = vadd.xlane.f32.xlu2 %v1508_v30 }
 0x851   : >> { %v1468_v1 = vpop.xlane.xlu2 %1467 }
 0x852   : >> { %v1480_v8 = vsub.f32 %v1448_v39, %v1468_v1  ;;  %v2179_v39 = vld [vmem:[#allocation4 + $0x18] sm:$0xff] }
 0x853   : >> { %1591 = vmatpush.bf16.msra.mxu0 %v2179_v39 }
 0x854   : >> { %v3223_v48 = vpop.eup %2478  ;;  %v1493_v60 = vmul.f32 1.442695, %v1480_v8 }
 0x855   : >> { %v1511_v58 = vsel %vm968_vm0, %v3223_v48, 0.0 }
 0x856   : >> { %2480 = vpow2.f32 %v1493_v60  ;;  %1512 = vadd.xlane.f32.xlu0 %v1511_v58 }
 0x857   : >> { %1592 = vmatpush.bf16.msra.mxu0 %v2178_v52 }
 0x859   : >> { %v1471_v15 = vpop.xlane.xlu0 %1470 }
 0x85a   : >> { %v1481_v11 = vsub.f32 %v1449_v23, %v1471_v15  ;;  %v2182_v23 = vld [vmem:[#allocation3 + $0x8] sm:$0xff] }
 0x85b   : >> { %1708 = vmatpush.bf16.msrb.mxu1 %v2182_v23  ;;  %1593 = vmatpush.bf16.msra.mxu0 %v2177_v35 }
 0x85c   : >> { %v2481_v32 = vpop.eup %2480  ;;  %v1495_v42 = vmul.f32 1.442695, %v1481_v11 }
 0x85d   : >> { %v1514_v49 = vsel %vm968_vm0, %v2481_v32, 0.0 }
 0x85e   : >> { %2482 = vpow2.f32 %v1495_v42  ;;  %1515 = vadd.xlane.f32.xlu1 %v1514_v49 }
 0x85f   : >> { %1709 = vmatpush.bf16.msrb.mxu1 %v2181_v59 }
 0x861   : >> { %v1474_v55 = vpop.xlane.xlu1 %1473 }
 0x862   : >> { %v1482_v28 = vsub.f32 %v1450_v25, %v1474_v55  ;;  %v2176_v25 = vld [vmem:[#allocation4] sm:$0xff] }
 0x863   : >> { %1594 = vmatpush.bf16.msra.mxu0 %v2176_v25  ;;  %1710 = vmatpush.bf16.msrb.mxu1 %v2180_v43 }
 0x864   : >> { %v3228_v57 = vpop.eup %2482  ;;  %v1497_v63 = vmul.f32 1.442695, %v1482_v28 }
 0x865   : >> { %v1517_v31 = vsel %vm968_vm0, %v3228_v57, 0.0 }
 0x866   : >> { %2484 = vpow2.f32 %v1497_v63  ;;  %1518 = vadd.xlane.f32.xlu2 %v1517_v31 }
 0x86c   : >> { %v2485_v14 = vpop.eup %2484 }
 0x86d   : >> { %v1520_v56 = vsel %vm968_vm0, %v2485_v14, 0.0 }
 0x86e   : >> { %1521 = vadd.xlane.f32.xlu0 %v1520_v56 }
 0x8a9   : >> { %v1501_v46 = vpop.xlane.xlu2 %1500 }
 0x8aa   : >> { %2486 = vrcp.f32 %v1501_v46 }
 0x8b0   : >> { %v2487_v38 = vpop.eup %2486 }
 0x8b1   : >> { %v1504_v47 = vpop.xlane.xlu0 %1503  ;;  %v1531_v34 = vmul.f32 %v2487_v38, %v3207_v2 }
 0x8b2   : >> { %2488 = vrcp.f32 %v1504_v47 }
 0x8b8   : >> { %v2489_v22 = vpop.eup %2488 }
 0x8b9   : >> { %v1532_v40 = vmul.f32 %v2489_v22, %v3211_v33  ;;  %v1507_v45 = vpop.xlane.xlu1 %1506 }
 0x8ba   : >> { %2490 = vrcp.f32 %v1507_v45 }
 0x8bb   : >> { %v1539_v53 = vpack.c.bf16 %v1532_v40, %v1531_v34 }
 0x8bd   : >> { %2117 = vmatmul.msk.bf16.vlgmr.msra.gmra.mxu0 %vm968_vm0, %v1539_v53  ;;  %2137 = vmatmul.msk.bf16.vlgmr.msrb.gmra.mxu1 %vm968_vm0, %v1539_v53 }
 0x8c0   : >> { %v2491_v6 = vpop.eup %2490 }
 0x8c1   : >> { %v1510_v54 = vpop.xlane.xlu2 %1509  ;;  %v1533_v21 = vmul.f32 %v2491_v6, %v3215_v20 }
 0x8c2   : >> { %2492 = vrcp.f32 %v1510_v54 }
 0x8c8   : >> { %v2493_v26 = vpop.eup %2492 }
 0x8c9   : >> { %v1534_v61 = vmul.f32 %v2493_v26, %v3219_v19  ;;  %v1513_v9 = vpop.xlane.xlu0 %1512 }
 0x8ca   : >> { %2494 = vrcp.f32 %v1513_v9 }
 0x8cb   : >> { %v1540_v50 = vpack.c.bf16 %v1534_v61, %v1533_v21 }
 0x8cd   : >> { %2118 = vmatmul.msk.bf16.gmra.mxu0 %vm968_vm0, %v1540_v50  ;;  %2138 = vmatmul.msk.bf16.gmra.mxu1 %vm968_vm0, %v1540_v50 }
 0x8d0   : >> { %v2495_v33 = vpop.eup %2494 }
 0x8d1   : >> { %v1516_v2 = vpop.xlane.xlu1 %1515  ;;  %v1535_v24 = vmul.f32 %v2495_v33, %v3223_v48 }
 0x8d2   : >> { %2496 = vrcp.f32 %v1516_v2 }
 0x8d8   : >> { %v2497_v10 = vpop.eup %2496 }
 0x8d9   : >> { %v1536_v51 = vmul.f32 %v2497_v10, %v2481_v32  ;;  %v1519_v1 = vpop.xlane.xlu2 %1518 }
 0x8da   : >> { %2498 = vrcp.f32 %v1519_v1 }
 0x8db   : >> { %v1541_v30 = vpack.c.bf16 %v1536_v51, %v1535_v24 }
 0x8dd   : >> { %2119 = vmatmul.msk.bf16.gmra.mxu0 %vm968_vm0, %v1541_v30  ;;  %2139 = vmatmul.msk.bf16.gmra.mxu1 %vm968_vm0, %v1541_v30 }
 0x8e0   : >> { %v2499_v19 = vpop.eup %2498 }
 0x8e1   : >> { %v1522_v20 = vpop.xlane.xlu0 %1521  ;;  %v1537_v60 = vmul.f32 %v2499_v19, %v3228_v57 }
 0x8e2   : >> { %2500 = vrcp.f32 %v1522_v20 }
 0x8e8   : >> { %v2501_v8 = vpop.eup %2500 }
 0x8e9   : >> { %v1538_v58 = vmul.f32 %v2501_v8, %v2485_v14 }
 0x8eb   : >> { %v1542_v15 = vpack.c.bf16 %v1538_v58, %v1537_v60 }
 0x8ed   : >> { %2120 = vmatmul.msk.bf16.gmra.mxu0 %vm968_vm0, %v1542_v15  ;;  %2140 = vmatmul.msk.bf16.gmra.mxu1 %vm968_vm0, %v1542_v15 }
 0x93a   : >> { %v1596_v48 = vpop.f32.mrf.mxu0  ;;  %v1712_v11 = vpop.f32.mrf.mxu1 }
 0x93b   : >> { %v3254_v52 = vmul.f32 %v1596_v48, %v3126_v36  ;;  %v3257_v23 = vadd.f32 %v1712_v11, %v3126_v36 }
 0x93d   : >> { %v1624_v36 = vmul.f32 %v3254_v52, %v3254_v52  ;;  %v1740_v47 = vmul.f32 %v3257_v23, %v3257_v23 }
 0x942   : >> { %v1598_v32 = vpop.f32.mrf.mxu0  ;;  %v1714_v42 = vpop.f32.mrf.mxu1 }
 0x943   : >> { %v3248_v39 = vmul.f32 %v1598_v32, %v3129_v27  ;;  %v3251_v57 = vadd.f32 %v1714_v42, %v3129_v27 }
 0x945   : >> { %v1625_v25 = vmul.f32 %v3248_v39, %v3248_v39  ;;  %v1741_v27 = vmul.f32 %v3251_v57, %v3251_v57 }
 0x947   : >> { %v1748_v40 = vadd.f32 %v1741_v27, %v1740_v47 }
 0x94a   : >> { %v1601_v49 = vpop.f32.mrf.mxu0  ;;  %v1717_v55 = vpop.f32.mrf.mxu1 }
 0x94b   : >> { %v3260_v35 = vmul.f32 %v1601_v49, %v3134_v0  ;;  %v3263_v59 = vadd.f32 %v1717_v55, %v3134_v0 }
 0x94d   : >> { %v1626_v0 = vmul.f32 %v3260_v35, %v3260_v35  ;;  %v1742_v38 = vmul.f32 %v3263_v59, %v3263_v59 }
 0x94f   : >> { %v1749_v50 = vadd.f32 %v1748_v40, %v1742_v38 }
 0x952   : >> { %v1603_v28 = vpop.f32.mrf.mxu0  ;;  %v1719_v63 = vpop.f32.mrf.mxu1 }
 0x953   : >> { %v3270_v43 = vmul.f32 %v1603_v28, %v3137_v41  ;;  %v3273_v46 = vadd.f32 %v1719_v63, %v3137_v41  ;;  %v1632_v41 = vadd.f32 %v1625_v25, %v1624_v36 }
 0x955   : >> { %v1627_v54 = vmul.f32 %v3270_v43, %v3270_v43  ;;  %v1743_v6 = vmul.f32 %v3273_v46, %v3273_v46  ;;  %v1633_v61 = vadd.f32 %v1632_v41, %v1626_v0 }
 0x957   : >> { %v1634_v10 = vadd.f32 %v1633_v61, %v1627_v54  ;;  %v1750_v24 = vadd.f32 %v1749_v50, %v1743_v6 }
 0x95a   : >> { %v1606_v31 = vpop.f32.mrf.mxu0  ;;  %v1722_v56 = vpop.f32.mrf.mxu1 }
 0x95b   : >> { %v3284_v22 = vmul.f32 %v1606_v31, %v3142_v7  ;;  %v3287_v34 = vadd.f32 %v1722_v56, %v3142_v7 }
 0x95d   : >> { %v1628_v7 = vmul.f32 %v3284_v22, %v3284_v22  ;;  %v1744_v9 = vmul.f32 %v3287_v34, %v3287_v34 }
 0x95f   : >> { %v1635_v30 = vadd.f32 %v1634_v10, %v1628_v7  ;;  %v1751_v1 = vadd.f32 %v1750_v24, %v1744_v9 }
 0x962   : >> { %v1608_v14 = vpop.f32.mrf.mxu0  ;;  %v1724_v44 = vpop.f32.mrf.mxu1 }
 0x963   : >> { %v3294_v26 = vmul.f32 %v1608_v14, %v3145_v37  ;;  %v3297_v21 = vadd.f32 %v1724_v44, %v3145_v37 }
 0x965   : >> { %v1629_v37 = vmul.f32 %v3294_v26, %v3294_v26  ;;  %v1745_v51 = vmul.f32 %v3297_v21, %v3297_v21 }
 0x967   : >> { %v1752_v58 = vadd.f32 %v1751_v1, %v1745_v51 }
 0x96a   : >> { %v1611_v53 = vpop.f32.mrf.mxu0  ;;  %v1727_v45 = vpop.f32.mrf.mxu1 }
 0x96b   : >> { %v3304_v2 = vmul.f32 %v1611_v53, %v3150_v62  ;;  %v3307_v33 = vadd.f32 %v1727_v45, %v3150_v62  ;;  %v1636_v62 = vadd.f32 %v1635_v30, %v1629_v37 }
 0x96d   : >> { %v1630_v20 = vmul.f32 %v3304_v2, %v3304_v2  ;;  %v1746_v19 = vmul.f32 %v3307_v33, %v3307_v33 }
 0x96f   : >> { %v1753_v42 = vadd.f32 %v1752_v58, %v1746_v19  ;;  %v1637_v49 = vadd.f32 %v1636_v62, %v1630_v20 }
 0x972   : >> { %v1613_v8 = vpop.f32.mrf.mxu0  ;;  %v1729_v60 = vpop.f32.mrf.mxu1 }
 0x973   : >> { %v3318_v15 = vmul.f32 %v1613_v8, %v3152_v29  ;;  %v3321_v48 = vadd.f32 %v1729_v60, %v3152_v29 }
 0x975   : >> { %v1631_v11 = vmul.f32 %v3318_v15, %v3318_v15  ;;  %v1747_v32 = vmul.f32 %v3321_v48, %v3321_v48 }
 0x977   : >> { %v1754_v55 = vadd.f32 %v1753_v42, %v1747_v32  ;;  %v1638_v28 = vadd.f32 %v1637_v49, %v1631_v11 }
 0x979   : >> { %1755 = vadd.xlane.f32.xlu2 %v1754_v55  ;;  %1639 = vadd.xlane.f32.xlu1 %v1638_v28 }
 0x9ec   : >> { %v1640_v63 = vpop.xlane.xlu1 %1639  ;;  %v1756_v27 = vpop.xlane.xlu2 %1755 }
 0x9ed   : >> { %v1641_v31 = vrot.slane %v1640_v63, 4  ;;  %v1757_v36 = vrot.slane %v1756_v27, 4 }
 0x9ef   : >> { %v1642_v56 = vadd.f32 %v1641_v31, %v1640_v63  ;;  %v1758_v0 = vadd.f32 %v1757_v36, %v1756_v27 }
 0x9f1   : >> { %v1643_v14 = vrot.slane %v1642_v56, 2  ;;  %v1759_v38 = vrot.slane %v1758_v0, 2 }
 0x9f3   : >> { %v1644_v44 = vadd.f32 %v1643_v14, %v1642_v56  ;;  %v1760_v53 = vadd.f32 %v1759_v38, %v1758_v0 }
 0x9f5   : >> { %v1645_v25 = vrot.slane %v1644_v44, 1  ;;  %v1761_v61 = vrot.slane %v1760_v53, 1 }
 0x9f7   : >> { %v1646_v29 = vadd.f32 %v1645_v25, %v1644_v44  ;;  %v1762_v9 = vadd.f32 %v1761_v61, %v1760_v53 }
 0x9f9   : >> { %2293 = vpush %v1646_v29 }
 0xa2a   : >> { %s2294_s23 = spop %2293 }
 0xa2b   : >> { %s1648_s24 = sadd.f32 1e-05, %s2294_s23 }
 0xa2d   : >> { %v1649_v47 = vstv %s1648_s24 }
 0xa2e   : >> { %2502 = vrsqrt.f32 %v1649_v47  ;;  %vm1656_vm13 = vweird.f32 %v1649_v47 }
 0xa34   : >> { %v2503_v41 = vpop.eup %2502 }
 0xa35   : >> { %v1651_v40 = vmul.f32 %v2503_v41, %v1649_v47  ;;  %vm1657_vm0 = vweird.f32 %v2503_v41 }
 0xa36   : >> { %vm1658_vm14 = vmor %vm1656_vm13, %vm1657_vm0 }
 0xa37   : >> { %v1652_v45 = vmul.f32 %v2503_v41, %v1651_v40 }
 0xa39   : >> { %v1653_v54 = vmul.f32 0.5, %v1652_v45 }
 0xa3b   : >> { %v1654_v6 = vsub.f32 1.5, %v1653_v54 }
 0xa3d   : >> { %v1655_v50 = vmul.f32 %v2503_v41, %v1654_v6 }
 0xa3f   : >> { %v1659_v7 = vsel %vm1658_vm14, %v2503_v41, %v1655_v50 }
 0xa40   : >> { %2295 = vpush %v1659_v7 }
 0xa41   : >> { %2297 = vpush %v1762_v9 }
 0xa71   : >> { %s2296_s25 = spop %2295 }
 0xa72   : >> { %s2298_s26 = spop %2297  ;;  %s1661_s30 = smul.f32 2.0, %s2296_s25 }
 0xa73   : >> { %s1764_s28 = sadd.f32 1e-05, %s2298_s26 }
 0xa74   : >> { %v1662_v8 = vstv %s1661_s30 }
 0xa75   : >> { %v1765_v10 = vstv %s1764_s28  ;;  %v1663_v60 = vmul.f32 %v1662_v8, %v3254_v52  ;;  %v1664_v62 = vmul.f32 %v1662_v8, %v3248_v39  ;;  %v1665_v58 = vmul.f32 %v1662_v8, %v3260_v35 }
 0xa76   : >> { %2504 = vrsqrt.f32 %v1765_v10  ;;  %vm1772_vm1 = vweird.f32 %v1765_v10  ;;  %v1666_v28 = vmul.f32 %v1662_v8, %v3270_v43  ;;  %v1667_v39 = vmul.f32 %v1662_v8, %v3284_v22 }
 0xa77   : >> { %v1669_v43 = vmul.f32 %v1662_v8, %v3304_v2  ;;  %v1670_v22 = vmul.f32 %v1662_v8, %v3318_v15 }
 0xa7c   : >> { %v2505_v24 = vpop.eup %2504 }
 0xa7d   : >> { %v1767_v37 = vmul.f32 %v2505_v24, %v1765_v10  ;;  %vm1773_vm15 = vweird.f32 %v2505_v24 }
 0xa7e   : >> { %vm1774_vm2 = vmor %vm1772_vm1, %vm1773_vm15 }
 0xa7f   : >> { %v1768_v51 = vmul.f32 %v2505_v24, %v1767_v37 }
 0xa81   : >> { %v1769_v30 = vmul.f32 0.5, %v1768_v51 }
 0xa83   : >> { %v1770_v1 = vsub.f32 1.5, %v1769_v30 }
 0xa85   : >> { %v1771_v20 = vmul.f32 %v2505_v24, %v1770_v1 }
 0xa87   : >> { %v1775_v19 = vsel %vm1774_vm2, %v2505_v24, %v1771_v20 }
 0xa88   : >> { %2299 = vpush %v1775_v19 }
 0xab9   : >> { %s2300_s9 = spop %2299 }
 0xaba   : >> { %s1777_s10 = smul.f32 2.0, %s2300_s9 }
 0xabc   : >> { %v1778_v11 = vstv %s1777_s10 }
 0xabd   : >> { %v1779_v32 = vmul.f32 %v1778_v11, %v3257_v23  ;;  %v1780_v42 = vmul.f32 %v1778_v11, %v3251_v57  ;;  %v1781_v49 = vmul.f32 %v1778_v11, %v3263_v59  ;;  %v1782_v55 = vmul.f32 %v1778_v11, %v3273_v46 }
 0xabe   : >> { %v1783_v63 = vmul.f32 %v1778_v11, %v3287_v34  ;;  %v1784_v35 = vmul.f32 %v1778_v11, %v3297_v21  ;;  %v1668_v57 = vmul.f32 %v1662_v8, %v3294_v26  ;;  %v1785_v59 = vmul.f32 %v1778_v11, %v3307_v33 }
 0xabf   : >> { %v1787_v31 = vadd.f32 %v1779_v32, %v1663_v60  ;;  %v1788_v56 = vadd.f32 %v1780_v42, %v1664_v62  ;;  %v1789_v52 = vadd.f32 %v1781_v49, %v1665_v58  ;;  %v1790_v14 = vadd.f32 %v1782_v55, %v1666_v28 }
 0xac0   : >> { %v1791_v25 = vadd.f32 %v1783_v63, %v1667_v39  ;;  %v1786_v34 = vmul.f32 %v1778_v11, %v3321_v48  ;;  %v1792_v27 = vadd.f32 %v1784_v35, %v1668_v57  ;;  %v1793_v21 = vadd.f32 %v1785_v59, %v1669_v43 }
 0xac1   : >> { %v1795_v44 = vmul.f32 %v1787_v31, %v1787_v31  ;;  %v1796_v23 = vmul.f32 %v1788_v56, %v1788_v56  ;;  %v1797_v46 = vmul.f32 %v1789_v52, %v1789_v52  ;;  %v1798_v36 = vmul.f32 %v1790_v14, %v1790_v14 }
 0xac2   : >> { %v1799_v0 = vmul.f32 %v1791_v25, %v1791_v25  ;;  %v1794_v41 = vadd.f32 %v1786_v34, %v1670_v22  ;;  %v1800_v40 = vmul.f32 %v1792_v27, %v1792_v27  ;;  %v1801_v53 = vmul.f32 %v1793_v21, %v1793_v21 }
 0xac3   : >> { %v1803_v29 = vadd.f32 %v1796_v23, %v1795_v44 }
 0xac4   : >> { %v1802_v45 = vmul.f32 %v1794_v41, %v1794_v41 }
 0xac5   : >> { %v1804_v47 = vadd.f32 %v1803_v29, %v1797_v46 }
 0xac7   : >> { %v1805_v38 = vadd.f32 %v1804_v47, %v1798_v36 }
 0xac9   : >> { %v1806_v26 = vadd.f32 %v1805_v38, %v1799_v0 }
 0xacb   : >> { %v1807_v33 = vadd.f32 %v1806_v26, %v1800_v40 }
 0xacd   : >> { %v1808_v54 = vadd.f32 %v1807_v33, %v1801_v53 }
 0xacf   : >> { %v1809_v6 = vadd.f32 %v1808_v54, %v1802_v45 }
 0xad1   : >> { %1810 = vadd.xlane.f32.xlu0 %v1809_v6 }
 0xb44   : >> { %v1811_v2 = vpop.xlane.xlu0 %1810 }
 0xb45   : >> { %v1812_v61 = vrot.slane %v1811_v2, 4 }
 0xb47   : >> { %v1813_v48 = vadd.f32 %v1812_v61, %v1811_v2 }
 0xb49   : >> { %v1814_v50 = vrot.slane %v1813_v48, 2 }
 0xb4b   : >> { %v1815_v7 = vadd.f32 %v1814_v50, %v1813_v48 }
 0xb4d   : >> { %v1816_v9 = vrot.slane %v1815_v7, 1 }
 0xb4f   : >> { %v1817_v10 = vadd.f32 %v1816_v9, %v1815_v7 }
 0xb51   : >> { %2301 = vpush %v1817_v10 }
 0xb82   : >> { %s2302_s11 = spop %2301 }
 0xb83   : >> { %s1819_s12 = sadd.f32 1e-05, %s2302_s11 }
 0xb85   : >> { %v1820_v15 = vstv %s1819_s12 }
 0xb86   : >> { %2506 = vrsqrt.f32 %v1820_v15  ;;  %vm1827_vm4 = vweird.f32 %v1820_v15 }
 0xb8c   : >> { %v2507_v24 = vpop.eup %2506 }
 0xb8d   : >> { %v1822_v37 = vmul.f32 %v2507_v24, %v1820_v15  ;;  %vm1828_vm3 = vweird.f32 %v2507_v24 }
 0xb8e   : >> { %vm1829_vm5 = vmor %vm1827_vm4, %vm1828_vm3 }
 0xb8f   : >> { %v1823_v51 = vmul.f32 %v2507_v24, %v1822_v37 }
 0xb91   : >> { %v1824_v30 = vmul.f32 0.5, %v1823_v51 }
 0xb93   : >> { %v1825_v1 = vsub.f32 1.5, %v1824_v30 }
 0xb95   : >> { %v1826_v20 = vmul.f32 %v2507_v24, %v1825_v1 }
 0xb97   : >> { %v1830_v19 = vsel %vm1829_vm5, %v2507_v24, %v1826_v20 }
 0xb98   : >> { %2303 = vpush %v1830_v19 }
 0xbc9   : >> { %s2304_s13 = spop %2303 }
 0xbca   : >> { %s1832_s14 = smul.f32 2.0, %s2304_s13 }
 0xbcc   : >> { %v1833_v8 = vstv %s1832_s14  ;;  %680 = sbr.rel (!%p678_p4) target bundleno = 333 (0x14d), region = 98 }
 0xbcd   : >> { %v1834_v60 = vmul.f32 %v1833_v8, %v1787_v31   ;;  %v1835_v62 = vmul.f32 %v1833_v8, %v1788_v56   ;;  %v1836_v58 = vmul.f32 %v1833_v8, %v1789_v52   ;;  %v1837_v11 = vmul.f32 %v1833_v8, %v1790_v14  }
 0xbce   : >> { %v1838_v32 = vmul.f32 %v1833_v8, %v1791_v25   ;;  %v1839_v42 = vmul.f32 %v1833_v8, %v1792_v27   ;;  %v1840_v49 = vmul.f32 %v1833_v8, %v1793_v21   ;;  %v1841_v55 = vmul.f32 %v1833_v8, %v1794_v41  }
 0xbcf   : >> { %v3392_v23 = vmov %v1837_v11  ;;  %v3393_v21 = vmov %v1836_v58  ;;  %v3394_v20 = vmov %v1835_v62  ;;  %v3395_v19 = vmov %v1834_v60  ;;  %1842 = vst [vmem:[%s2675_s29] sm:$0xff] (%p678_p4), %v1834_v60 }
 0xbd0   : >> { %v3388_v27 = vmov %v1841_v55  ;;  %v3389_v26 = vmov %v1840_v49  ;;  %v3390_v25 = vmov %v1839_v42  ;;  %v3391_v24 = vmov %v1838_v32  ;;  %1843 = vst [vmem:[%s2675_s29 + $0x8] sm:$0xff] (%p678_p4), %v1835_v62 }
 0xbd1   : > { %1844 = vst [vmem:[%s2675_s29 + $0x10] sm:$0xff] %v1836_v58 }
 0xbd2   : > { %1845 = vst [vmem:[%s2675_s29 + $0x18] sm:$0xff] %v1837_v11 }
 0xbd3   : > { %1846 = vst [vmem:[%s2675_s29 + $0x20] sm:$0xff] %v1838_v32 }
 0xbd4   : > { %1847 = vst [vmem:[%s2675_s29 + $0x28] sm:$0xff] %v1839_v42 }
 0xbd5   : > { %1848 = vst [vmem:[%s2675_s29 + $0x30] sm:$0xff] %v1840_v49 }
 0xbd6   : > { %1849 = vst [vmem:[%s2675_s29 + $0x38] sm:$0xff] %v1841_v55 }
 0xbd7 PF: > { %s18_s27 = sadd.s32 1, %s2550_s27  }
 0xbd8   : > { %p15_p5 = scmp.ge.s32.totalorder %s18_s27, 4  }
 0xbda   :  { %17 = sbr.rel (!%p15_p5) target bundleno = 1 (0x1), region = 109 }

</bundles_post_ra>
